<compile_context>
chip_gen: v7x
topology: tpu7x:2x2x1
jax: 0.10.0
libtpu: 0.0.40
codegen_flags: <defaults>
</compile_context>

<pallas_src>
import functools
import math

import jax
import jax.numpy as jnp
from jax import lax
from jax.experimental import pallas as pl
from jax.experimental.pallas import tpu as pltpu


_MASK_VALUE = -0.7 * float(jnp.finfo(jnp.float32).max)


def _mha_kernel(x_ref, wq_ref, wk_ref, wv_ref, bq_ref, bk_ref, bv_ref,
                wo_ref, bo_ref, o_ref,
                q_s, k_s, v_s, acc_s, m_s, l_s, attn_s,
                *, n_heads, d_head, tq, tkv, causal):
    # x_ref:  (1, S, D)         wq/wk/wv/wo: (D, D)     bq/bk/bv/bo: (1, D) f32
    # o_ref:  (1, tq, D)
    # q_s: (H, tq, dh)   k_s/v_s: (H, S, dh)   acc_s: (H, tq, dh) f32
    # m_s/l_s: (H, tq, 1) f32    attn_s: (tq, D)
    qi = pl.program_id(1)
    ki = pl.program_id(2)
    cdtype = x_ref.dtype

    q_start = pl.multiple_of(qi * tq, tq)
    kv_start = pl.multiple_of(ki * tkv, tkv)

    # ---- Fill K/V cache for this kv block (once per batch, during qi == 0) --
    @pl.when(qi == 0)
    def _fill_kv():
        x_kv = x_ref[0, pl.ds(kv_start, tkv), :]                      # (tkv, D)
        k_blk = (jnp.dot(x_kv, wk_ref[...],
                         preferred_element_type=jnp.float32)
                 + bk_ref[...]).astype(cdtype)                        # (tkv, D)
        v_blk = (jnp.dot(x_kv, wv_ref[...],
                         preferred_element_type=jnp.float32)
                 + bv_ref[...]).astype(cdtype)
        for h in range(n_heads):                                      # head-major cache
            k_s[h, pl.ds(kv_start, tkv), :] = k_blk[:, h * d_head:(h + 1) * d_head]
            v_s[h, pl.ds(kv_start, tkv), :] = v_blk[:, h * d_head:(h + 1) * d_head]

    # ---- New q block: project Q (scale folded into wq/bq), reset softmax ----
    @pl.when(ki == 0)
    def _init_q():
        x_q = x_ref[0, pl.ds(q_start, tq), :]                         # (tq, D)
        q_blk = (jnp.dot(x_q, wq_ref[...],
                         preferred_element_type=jnp.float32)
                 + bq_ref[...]).astype(cdtype)                        # (tq, D)
        for h in range(n_heads):
            q_s[h] = q_blk[:, h * d_head:(h + 1) * d_head]
        m_s[...] = jnp.full_like(m_s, -jnp.inf)
        l_s[...] = jnp.zeros_like(l_s)
        acc_s[...] = jnp.zeros_like(acc_s)

    # ---- Online-softmax attention of the q block vs. this kv block ----------
    def _attend():
        q = q_s[...]                                                  # (H, tq, dh)
        k = k_s[:, pl.ds(kv_start, tkv), :]                           # (H, tkv, dh)
        v = v_s[:, pl.ds(kv_start, tkv), :]                           # (H, tkv, dh)
        s = jnp.einsum('hqd,hkd->hqk', q, k,
                       preferred_element_type=jnp.float32)            # (H, tq, tkv) f32
        if causal:
            rows = lax.broadcasted_iota(jnp.int32, (tq, tkv), 0) + q_start
            cols = lax.broadcasted_iota(jnp.int32, (tq, tkv), 1) + kv_start
            s = jnp.where((cols > rows)[None, :, :], _MASK_VALUE, s)
        m_prev = m_s[...]
        m_new = jnp.maximum(m_prev, jnp.max(s, axis=-1, keepdims=True))
        alpha = jnp.exp(m_prev - m_new)                               # (H, tq, 1)
        p = jnp.exp(s - m_new)                                        # (H, tq, tkv)
        l_s[...] = alpha * l_s[...] + jnp.sum(p, axis=-1, keepdims=True)
        acc_s[...] = alpha * acc_s[...] + jnp.einsum(
            'hqk,hkd->hqd', p.astype(cdtype), v,
            preferred_element_type=jnp.float32)
        m_s[...] = m_new

    if causal:
        # Skip kv blocks that lie entirely in the masked future of this q block.
        pl.when(kv_start <= q_start + (tq - 1))(_attend)
    else:
        _attend()

    # ---- Last kv block: normalize, merge heads, out-projection, store -------
    @pl.when(ki == pl.num_programs(2) - 1)
    def _finalize():
        inv_l = pl.reciprocal(l_s[...], approx=True)                  # (H, tq, 1)
        attn = (acc_s[...] * inv_l).astype(cdtype)                    # (H, tq, dh)
        for h in range(n_heads):
            attn_s[:, h * d_head:(h + 1) * d_head] = attn[h]
        y = jnp.dot(attn_s[...], wo_ref[...],
                    preferred_element_type=jnp.float32) + bo_ref[...]
        o_ref[0] = y.astype(o_ref.dtype)


def _pick_tile(n, cap):
    """Largest tile <= cap that divides n and is a multiple of 8 (else n)."""
    if n <= cap:
        return n
    t = (cap // 8) * 8
    while t >= 8:
        if n % t == 0:
            return t
        t -= 8
    return n


def self_attention(x, w_in, b_in, w_out, b_out, *, n_heads,
                   causal_mask=False, q_block=256, kv_block=256,
                   vmem_limit_bytes=None):
    """Multi-head self-attention.  x: (B, S, D);  w_in: (D, 3D);  w_out: (D, D)."""
    B, S, D = x.shape
    if D % n_heads != 0:
        raise ValueError(f"d_embed={D} must be divisible by n_heads={n_heads}")
    d_head = D // n_heads
    cdtype = x.dtype
    scale = 1.0 / math.sqrt(d_head)

    # Split the fused in_proj into Q/K/V pieces; fold 1/sqrt(d_head) into the
    # Q weights + bias (free, done once outside the kernel).  Weights are kept
    # in the input's dtype (bf16-friendly); biases stay f32 (added to the f32
    # matmul accumulators).
    wq = (w_in[:, 0 * D:1 * D] * scale).astype(cdtype)
    wk = w_in[:, 1 * D:2 * D].astype(cdtype)
    wv = w_in[:, 2 * D:3 * D].astype(cdtype)
    wo = w_out.astype(cdtype)
    bq = (b_in[0 * D:1 * D] * scale).astype(jnp.float32).reshape(1, D)
    bk = b_in[1 * D:2 * D].astype(jnp.float32).reshape(1, D)
    bv = b_in[2 * D:3 * D].astype(jnp.float32).reshape(1, D)
    bo = b_out.astype(jnp.float32).reshape(1, D)

    tq = _pick_tile(S, q_block)
    tkv = _pick_tile(S, kv_block)
    n_q = S // tq
    n_kv = S // tkv

    kernel = functools.partial(_mha_kernel, n_heads=n_heads, d_head=d_head,
                               tq=tq, tkv=tkv, causal=bool(causal_mask))

    cparams = dict(dimension_semantics=("parallel", "arbitrary", "arbitrary"))
    if vmem_limit_bytes is not None:
        cparams["vmem_limit_bytes"] = int(vmem_limit_bytes)

    return pl.pallas_call(
        kernel,
        out_shape=jax.ShapeDtypeStruct((B, S, D), x.dtype),
        grid_spec=pltpu.PrefetchScalarGridSpec(
            num_scalar_prefetch=0,
            grid=(B, n_q, n_kv),
            in_specs=[
                pl.BlockSpec((1, S, D), lambda b, qi, ki: (b, 0, 0)),    # x
                pl.BlockSpec((D, D), lambda b, qi, ki: (0, 0)),          # wq
                pl.BlockSpec((D, D), lambda b, qi, ki: (0, 0)),          # wk
                pl.BlockSpec((D, D), lambda b, qi, ki: (0, 0)),          # wv
                pl.BlockSpec((1, D), lambda b, qi, ki: (0, 0)),          # bq
                pl.BlockSpec((1, D), lambda b, qi, ki: (0, 0)),          # bk
                pl.BlockSpec((1, D), lambda b, qi, ki: (0, 0)),          # bv
                pl.BlockSpec((D, D), lambda b, qi, ki: (0, 0)),          # wo
                pl.BlockSpec((1, D), lambda b, qi, ki: (0, 0)),          # bo
            ],
            out_specs=pl.BlockSpec((1, tq, D), lambda b, qi, ki: (b, qi, 0)),
            scratch_shapes=[
                pltpu.VMEM((n_heads, tq, d_head), cdtype),       # q_s
                pltpu.VMEM((n_heads, S, d_head), cdtype),        # k_s (full-seq cache)
                pltpu.VMEM((n_heads, S, d_head), cdtype),        # v_s (full-seq cache)
                pltpu.VMEM((n_heads, tq, d_head), jnp.float32),  # acc_s
                pltpu.VMEM((n_heads, tq, 1), jnp.float32),       # m_s
                pltpu.VMEM((n_heads, tq, 1), jnp.float32),       # l_s
                pltpu.VMEM((tq, D), cdtype),                     # attn_s (merged heads)
            ],
        ),
        compiler_params=pltpu.CompilerParams(**cparams),
    )(x, wq, wk, wv, bq, bk, bv, wo, bo)


def _reference(x, w_in, b_in, w_out, b_out, n_heads, causal_mask=False):
    B, S, D = x.shape
    d_head = D // n_heads
    qkv = x @ w_in + b_in
    q, k, v = jnp.split(qkv, 3, axis=-1)
    q = q.reshape(B, S, n_heads, d_head).transpose(0, 2, 1, 3)
    k = k.reshape(B, S, n_heads, d_head).transpose(0, 2, 1, 3)
    v = v.reshape(B, S, n_heads, d_head).transpose(0, 2, 1, 3)
    w = jnp.einsum("bhqd,bhkd->bhqk", q, k)
    if causal_mask:
        mask = jnp.triu(jnp.ones((S, S), dtype=bool), 1)
        w = jnp.where(mask, -jnp.inf, w)
    w = w / math.sqrt(d_head)
    w = jax.nn.softmax(w, axis=-1)
    o = jnp.einsum("bhqk,bhkd->bhqd", w, v)
    o = o.transpose(0, 2, 1, 3).reshape(B, S, D)
    return o @ w_out + b_out


if __name__ == "__main__":
    def _make(key, B, S, D):
        kx, k1, k2, k3, k4 = jax.random.split(key, 5)
        x = jax.random.normal(kx, (B, S, D), dtype=jnp.float32)
        w_in = jax.random.normal(k1, (D, 3 * D), dtype=jnp.float32) * 0.05
        b_in = jax.random.normal(k2, (3 * D,), dtype=jnp.float32) * 0.05
        w_out = jax.random.normal(k3, (D, D), dtype=jnp.float32) * 0.05
        b_out = jax.random.normal(k4, (D,), dtype=jnp.float32) * 0.05
        return x, w_in, b_in, w_out, b_out

    key = jax.random.PRNGKey(0)
    k_small, k_big = jax.random.split(key)

    # Small config matching the module's toy shapes (single block).
    B, S, D, H = 2, 8, 32, 4
    x, w_in, b_in, w_out, b_out = _make(k_small, B, S, D)
    for causal in (False, True):
        out = jax.block_until_ready(
            self_attention(x, w_in, b_in, w_out, b_out, n_heads=H,
                           causal_mask=causal))
        ref = _reference(x, w_in, b_in, w_out, b_out, H, causal_mask=causal)
        assert out.shape == (B, S, D)
        assert jnp.allclose(out, ref, atol=2e-3, rtol=2e-3), \
            f"small mismatch (causal={causal}): {jnp.max(jnp.abs(out - ref))}"

    # Larger config exercising the (batch, q-block, kv-block) flash tiling.
    B, S, D, H = 1, 512, 128, 4
    x, w_in, b_in, w_out, b_out = _make(k_big, B, S, D)
    for causal in (False, True):
        out = jax.block_until_ready(
            self_attention(x, w_in, b_in, w_out, b_out, n_heads=H,
                           causal_mask=causal, q_block=128, kv_block=128))
        ref = _reference(x, w_in, b_in, w_out, b_out, H, causal_mask=causal)
        assert out.shape == (B, S, D)
        assert jnp.allclose(out, ref, atol=2e-3, rtol=2e-3), \
            f"tiled mismatch (causal={causal}): {jnp.max(jnp.abs(out - ref))}"

    print("KERNEL_OK")
</pallas_src>

<mosaic_0001>
module attributes {stable_mosaic.version = 11 : i64} {
  func.func @_mha_kernel(%arg0: i32, %arg1: i32, %arg2: i32, %arg3: memref<1x8x32xf32, #tpu.memory_space<vmem>>, %arg4: memref<32x32xf32, #tpu.memory_space<vmem>>, %arg5: memref<32x32xf32, #tpu.memory_space<vmem>>, %arg6: memref<32x32xf32, #tpu.memory_space<vmem>>, %arg7: memref<1x32xf32, #tpu.memory_space<vmem>>, %arg8: memref<1x32xf32, #tpu.memory_space<vmem>>, %arg9: memref<1x32xf32, #tpu.memory_space<vmem>>, %arg10: memref<32x32xf32, #tpu.memory_space<vmem>>, %arg11: memref<1x32xf32, #tpu.memory_space<vmem>>, %arg12: memref<1x8x32xf32, #tpu.memory_space<vmem>>, %arg13: memref<4x8x8xf32, #tpu.memory_space<vmem>>, %arg14: memref<4x8x8xf32, #tpu.memory_space<vmem>>, %arg15: memref<4x8x8xf32, #tpu.memory_space<vmem>>, %arg16: memref<4x8x8xf32, #tpu.memory_space<vmem>>, %arg17: memref<4x8x1xf32, #tpu.memory_space<vmem>>, %arg18: memref<4x8x1xf32, #tpu.memory_space<vmem>>, %arg19: memref<8x32xf32, #tpu.memory_space<vmem>>) attributes {dimension_semantics = [#tpu.dimension_semantics<parallel>, #tpu.dimension_semantics<arbitrary>, #tpu.dimension_semantics<arbitrary>], iteration_bounds = array<i64: 2, 1, 1>, scalar_prefetch = 0 : i64, scratch_operands = 7 : i64, tpu.core_type = #tpu.core_type<tc>, window_params = [{transform_indices = @transform_0, window_bounds = array<i64: 1, 8, 32>}, {pipeline_mode = #tpu.pipeline_mode<synchronous>, transform_indices = @transform_1, window_bounds = array<i64: 32, 32>}, {pipeline_mode = #tpu.pipeline_mode<synchronous>, transform_indices = @transform_2, window_bounds = array<i64: 32, 32>}, {pipeline_mode = #tpu.pipeline_mode<synchronous>, transform_indices = @transform_3, window_bounds = array<i64: 32, 32>}, {pipeline_mode = #tpu.pipeline_mode<synchronous>, transform_indices = @transform_4, window_bounds = array<i64: 1, 32>}, {pipeline_mode = #tpu.pipeline_mode<synchronous>, transform_indices = @transform_5, window_bounds = array<i64: 1, 32>}, {pipeline_mode = #tpu.pipeline_mode<synchronous>, transform_indices = @transform_6, window_bounds = array<i64: 1, 32>}, {pipeline_mode = #tpu.pipeline_mode<synchronous>, transform_indices = @transform_7, window_bounds = array<i64: 32, 32>}, {pipeline_mode = #tpu.pipeline_mode<synchronous>, transform_indices = @transform_8, window_bounds = array<i64: 1, 32>}, {transform_indices = @transform_9, window_bounds = array<i64: 1, 8, 32>}]} {
    %c8_i32 = arith.constant 8 : i32
    %0 = arith.muli %arg1, %c8_i32 : i32
    %1 = tpu.assume_multiple %0, 8 : i32
    %c8_i32_0 = arith.constant 8 : i32
    %2 = arith.muli %arg2, %c8_i32_0 : i32
    %3 = tpu.assume_multiple %2, 8 : i32
    %c0_i32 = arith.constant 0 : i32
    %4 = arith.cmpi eq, %arg1, %c0_i32 : i32
    %5 = arith.extui %4 : i1 to i32
    %c0_i32_1 = arith.constant 0 : i32
    %6 = arith.cmpi ne, %5, %c0_i32_1 : i32
    scf.if %6 {
      %c0_33 = arith.constant 0 : index
      %41 = arith.index_cast %3 : i32 to index
      %c0_34 = arith.constant 0 : index
      %42 = vector.load %arg3[%c0_33, %41, %c0_34] : memref<1x8x32xf32, #tpu.memory_space<vmem>>, vector<1x8x32xf32>
      %43 = vector.shape_cast %42 : vector<1x8x32xf32> to vector<8x32xf32>
      %c0_35 = arith.constant 0 : index
      %c0_36 = arith.constant 0 : index
      %44 = vector.load %arg5[%c0_35, %c0_36] : memref<32x32xf32, #tpu.memory_space<vmem>>, vector<32x32xf32>
      %cst_37 = arith.constant dense<0.000000e+00> : vector<8x32xf32>
      %45 = tpu.matmul %43, %44, %cst_37 {dimension_numbers = #tpu.dot_dimension_numbers<[1], [0], [0], [1], [0, 0, 1, 1], [], []>} : vector<8x32xf32>, vector<32x32xf32>, vector<8x32xf32> -> vector<8x32xf32>
      %c0_38 = arith.constant 0 : index
      %c0_39 = arith.constant 0 : index
      %46 = vector.load %arg8[%c0_38, %c0_39] : memref<1x32xf32, #tpu.memory_space<vmem>>, vector<1x32xf32>
      %47 = vector.broadcast %46 : vector<1x32xf32> to vector<8x32xf32>
      %48 = arith.addf %45, %47 : vector<8x32xf32>
      %c0_40 = arith.constant 0 : index
      %c0_41 = arith.constant 0 : index
      %49 = vector.load %arg6[%c0_40, %c0_41] : memref<32x32xf32, #tpu.memory_space<vmem>>, vector<32x32xf32>
      %cst_42 = arith.constant dense<0.000000e+00> : vector<8x32xf32>
      %50 = tpu.matmul %43, %49, %cst_42 {dimension_numbers = #tpu.dot_dimension_numbers<[1], [0], [0], [1], [0, 0, 1, 1], [], []>} : vector<8x32xf32>, vector<32x32xf32>, vector<8x32xf32> -> vector<8x32xf32>
      %c0_43 = arith.constant 0 : index
      %c0_44 = arith.constant 0 : index
      %51 = vector.load %arg9[%c0_43, %c0_44] : memref<1x32xf32, #tpu.memory_space<vmem>>, vector<1x32xf32>
      %52 = vector.broadcast %51 : vector<1x32xf32> to vector<8x32xf32>
      %53 = arith.addf %50, %52 : vector<8x32xf32>
      %54 = vector.extract_strided_slice %48 {offsets = [0, 0], sizes = [8, 8], strides = [1, 1]} : vector<8x32xf32> to vector<8x8xf32>
      %c0_45 = arith.constant 0 : index
      %55 = arith.index_cast %3 : i32 to index
      %c0_46 = arith.constant 0 : index
      %56 = vector.load %arg14[%c0_45, %55, %c0_46] : memref<4x8x8xf32, #tpu.memory_space<vmem>>, vector<1x8x8xf32>
      %57 = vector.shape_cast %56 : vector<1x8x8xf32> to vector<8x8xf32>
      %58 = vector.shape_cast %54 : vector<8x8xf32> to vector<1x8x8xf32>
      tpu.vector_store %arg14[%c0_45, %55, %c0_46], %58 {strides = array<i32>} : memref<4x8x8xf32, #tpu.memory_space<vmem>>, vector<1x8x8xf32>,
      %59 = vector.extract_strided_slice %53 {offsets = [0, 0], sizes = [8, 8], strides = [1, 1]} : vector<8x32xf32> to vector<8x8xf32>
      %c0_47 = arith.constant 0 : index
      %60 = arith.index_cast %3 : i32 to index
      %c0_48 = arith.constant 0 : index
      %61 = vector.load %arg15[%c0_47, %60, %c0_48] : memref<4x8x8xf32, #tpu.memory_space<vmem>>, vector<1x8x8xf32>
      %62 = vector.shape_cast %61 : vector<1x8x8xf32> to vector<8x8xf32>
      %63 = vector.shape_cast %59 : vector<8x8xf32> to vector<1x8x8xf32>
      tpu.vector_store %arg15[%c0_47, %60, %c0_48], %63 {strides = array<i32>} : memref<4x8x8xf32, #tpu.memory_space<vmem>>, vector<1x8x8xf32>,
      %64 = vector.extract_strided_slice %48 {offsets = [0, 8], sizes = [8, 8], strides = [1, 1]} : vector<8x32xf32> to vector<8x8xf32>
      %c1 = arith.constant 1 : index
      %65 = arith.index_cast %3 : i32 to index
      %c0_49 = arith.constant 0 : index
      %66 = vector.load %arg14[%c1, %65, %c0_49] : memref<4x8x8xf32, #tpu.memory_space<vmem>>, vector<1x8x8xf32>
      %67 = vector.shape_cast %66 : vector<1x8x8xf32> to vector<8x8xf32>
      %68 = vector.shape_cast %64 : vector<8x8xf32> to vector<1x8x8xf32>
      tpu.vector_store %arg14[%c1, %65, %c0_49], %68 {strides = array<i32>} : memref<4x8x8xf32, #tpu.memory_space<vmem>>, vector<1x8x8xf32>,
      %69 = vector.extract_strided_slice %53 {offsets = [0, 8], sizes = [8, 8], strides = [1, 1]} : vector<8x32xf32> to vector<8x8xf32>
      %c1_50 = arith.constant 1 : index
      %70 = arith.index_cast %3 : i32 to index
      %c0_51 = arith.constant 0 : index
      %71 = vector.load %arg15[%c1_50, %70, %c0_51] : memref<4x8x8xf32, #tpu.memory_space<vmem>>, vector<1x8x8xf32>
      %72 = vector.shape_cast %71 : vector<1x8x8xf32> to vector<8x8xf32>
      %73 = vector.shape_cast %69 : vector<8x8xf32> to vector<1x8x8xf32>
      tpu.vector_store %arg15[%c1_50, %70, %c0_51], %73 {strides = array<i32>} : memref<4x8x8xf32, #tpu.memory_space<vmem>>, vector<1x8x8xf32>,
      %74 = vector.extract_strided_slice %48 {offsets = [0, 16], sizes = [8, 8], strides = [1, 1]} : vector<8x32xf32> to vector<8x8xf32>
      %c2 = arith.constant 2 : index
      %75 = arith.index_cast %3 : i32 to index
      %c0_52 = arith.constant 0 : index
      %76 = vector.load %arg14[%c2, %75, %c0_52] : memref<4x8x8xf32, #tpu.memory_space<vmem>>, vector<1x8x8xf32>
      %77 = vector.shape_cast %76 : vector<1x8x8xf32> to vector<8x8xf32>
      %78 = vector.shape_cast %74 : vector<8x8xf32> to vector<1x8x8xf32>
      tpu.vector_store %arg14[%c2, %75, %c0_52], %78 {strides = array<i32>} : memref<4x8x8xf32, #tpu.memory_space<vmem>>, vector<1x8x8xf32>,
      %79 = vector.extract_strided_slice %53 {offsets = [0, 16], sizes = [8, 8], strides = [1, 1]} : vector<8x32xf32> to vector<8x8xf32>
      %c2_53 = arith.constant 2 : index
      %80 = arith.index_cast %3 : i32 to index
      %c0_54 = arith.constant 0 : index
      %81 = vector.load %arg15[%c2_53, %80, %c0_54] : memref<4x8x8xf32, #tpu.memory_space<vmem>>, vector<1x8x8xf32>
      %82 = vector.shape_cast %81 : vector<1x8x8xf32> to vector<8x8xf32>
      %83 = vector.shape_cast %79 : vector<8x8xf32> to vector<1x8x8xf32>
      tpu.vector_store %arg15[%c2_53, %80, %c0_54], %83 {strides = array<i32>} : memref<4x8x8xf32, #tpu.memory_space<vmem>>, vector<1x8x8xf32>,
      %84 = vector.extract_strided_slice %48 {offsets = [0, 24], sizes = [8, 8], strides = [1, 1]} : vector<8x32xf32> to vector<8x8xf32>
      %c3 = arith.constant 3 : index
      %85 = arith.index_cast %3 : i32 to index
      %c0_55 = arith.constant 0 : index
      %86 = vector.load %arg14[%c3, %85, %c0_55] : memref<4x8x8xf32, #tpu.memory_space<vmem>>, vector<1x8x8xf32>
      %87 = vector.shape_cast %86 : vector<1x8x8xf32> to vector<8x8xf32>
      %88 = vector.shape_cast %84 : vector<8x8xf32> to vector<1x8x8xf32>
      tpu.vector_store %arg14[%c3, %85, %c0_55], %88 {strides = array<i32>} : memref<4x8x8xf32, #tpu.memory_space<vmem>>, vector<1x8x8xf32>,
      %89 = vector.extract_strided_slice %53 {offsets = [0, 24], sizes = [8, 8], strides = [1, 1]} : vector<8x32xf32> to vector<8x8xf32>
      %c3_56 = arith.constant 3 : index
      %90 = arith.index_cast %3 : i32 to index
      %c0_57 = arith.constant 0 : index
      %91 = vector.load %arg15[%c3_56, %90, %c0_57] : memref<4x8x8xf32, #tpu.memory_space<vmem>>, vector<1x8x8xf32>
      %92 = vector.shape_cast %91 : vector<1x8x8xf32> to vector<8x8xf32>
      %93 = vector.shape_cast %89 : vector<8x8xf32> to vector<1x8x8xf32>
      tpu.vector_store %arg15[%c3_56, %90, %c0_57], %93 {strides = array<i32>} : memref<4x8x8xf32, #tpu.memory_space<vmem>>, vector<1x8x8xf32>,
    } else {
    }
    %c0_i32_2 = arith.constant 0 : i32
    %7 = arith.cmpi eq, %arg2, %c0_i32_2 : i32
    %8 = arith.extui %7 : i1 to i32
    %c0_i32_3 = arith.constant 0 : i32
    %9 = arith.cmpi ne, %8, %c0_i32_3 : i32
    scf.if %9 {
      %c0_33 = arith.constant 0 : index
      %41 = arith.index_cast %1 : i32 to index
      %c0_34 = arith.constant 0 : index
      %42 = vector.load %arg3[%c0_33, %41, %c0_34] : memref<1x8x32xf32, #tpu.memory_space<vmem>>, vector<1x8x32xf32>
      %43 = vector.shape_cast %42 : vector<1x8x32xf32> to vector<8x32xf32>
      %c0_35 = arith.constant 0 : index
      %c0_36 = arith.constant 0 : index
      %44 = vector.load %arg4[%c0_35, %c0_36] : memref<32x32xf32, #tpu.memory_space<vmem>>, vector<32x32xf32>
      %cst_37 = arith.constant dense<0.000000e+00> : vector<8x32xf32>
      %45 = tpu.matmul %43, %44, %cst_37 {dimension_numbers = #tpu.dot_dimension_numbers<[1], [0], [0], [1], [0, 0, 1, 1], [], []>} : vector<8x32xf32>, vector<32x32xf32>, vector<8x32xf32> -> vector<8x32xf32>
      %c0_38 = arith.constant 0 : index
      %c0_39 = arith.constant 0 : index
      %46 = vector.load %arg7[%c0_38, %c0_39] : memref<1x32xf32, #tpu.memory_space<vmem>>, vector<1x32xf32>
      %47 = vector.broadcast %46 : vector<1x32xf32> to vector<8x32xf32>
      %48 = arith.addf %45, %47 : vector<8x32xf32>
      %49 = vector.extract_strided_slice %48 {offsets = [0, 0], sizes = [8, 8], strides = [1, 1]} : vector<8x32xf32> to vector<8x8xf32>
      %c0_40 = arith.constant 0 : index
      %c0_41 = arith.constant 0 : index
      %c0_42 = arith.constant 0 : index
      %50 = vector.load %arg13[%c0_40, %c0_41, %c0_42] : memref<4x8x8xf32, #tpu.memory_space<vmem>>, vector<1x8x8xf32>
      %51 = vector.shape_cast %50 : vector<1x8x8xf32> to vector<8x8xf32>
      %52 = vector.shape_cast %49 : vector<8x8xf32> to vector<1x8x8xf32>
      tpu.vector_store %arg13[%c0_40, %c0_41, %c0_42], %52 {strides = array<i32>} : memref<4x8x8xf32, #tpu.memory_space<vmem>>, vector<1x8x8xf32>,
      %53 = vector.extract_strided_slice %48 {offsets = [0, 8], sizes = [8, 8], strides = [1, 1]} : vector<8x32xf32> to vector<8x8xf32>
      %c1 = arith.constant 1 : index
      %c0_43 = arith.constant 0 : index
      %c0_44 = arith.constant 0 : index
      %54 = vector.load %arg13[%c1, %c0_43, %c0_44] : memref<4x8x8xf32, #tpu.memory_space<vmem>>, vector<1x8x8xf32>
      %55 = vector.shape_cast %54 : vector<1x8x8xf32> to vector<8x8xf32>
      %56 = vector.shape_cast %53 : vector<8x8xf32> to vector<1x8x8xf32>
      tpu.vector_store %arg13[%c1, %c0_43, %c0_44], %56 {strides = array<i32>} : memref<4x8x8xf32, #tpu.memory_space<vmem>>, vector<1x8x8xf32>,
      %57 = vector.extract_strided_slice %48 {offsets = [0, 16], sizes = [8, 8], strides = [1, 1]} : vector<8x32xf32> to vector<8x8xf32>
      %c2 = arith.constant 2 : index
      %c0_45 = arith.constant 0 : index
      %c0_46 = arith.constant 0 : index
      %58 = vector.load %arg13[%c2, %c0_45, %c0_46] : memref<4x8x8xf32, #tpu.memory_space<vmem>>, vector<1x8x8xf32>
      %59 = vector.shape_cast %58 : vector<1x8x8xf32> to vector<8x8xf32>
      %60 = vector.shape_cast %57 : vector<8x8xf32> to vector<1x8x8xf32>
      tpu.vector_store %arg13[%c2, %c0_45, %c0_46], %60 {strides = array<i32>} : memref<4x8x8xf32, #tpu.memory_space<vmem>>, vector<1x8x8xf32>,
      %61 = vector.extract_strided_slice %48 {offsets = [0, 24], sizes = [8, 8], strides = [1, 1]} : vector<8x32xf32> to vector<8x8xf32>
      %c3 = arith.constant 3 : index
      %c0_47 = arith.constant 0 : index
      %c0_48 = arith.constant 0 : index
      %62 = vector.load %arg13[%c3, %c0_47, %c0_48] : memref<4x8x8xf32, #tpu.memory_space<vmem>>, vector<1x8x8xf32>
      %63 = vector.shape_cast %62 : vector<1x8x8xf32> to vector<8x8xf32>
      %64 = vector.shape_cast %61 : vector<8x8xf32> to vector<1x8x8xf32>
      tpu.vector_store %arg13[%c3, %c0_47, %c0_48], %64 {strides = array<i32>} : memref<4x8x8xf32, #tpu.memory_space<vmem>>, vector<1x8x8xf32>,
      %cst_49 = arith.constant 0xFF800000 : f32
      %65 = vector.broadcast %cst_49 : f32 to vector<4x8x1xf32>
      %c0_50 = arith.constant 0 : index
      %c0_51 = arith.constant 0 : index
      %c0_52 = arith.constant 0 : index
      %66 = vector.load %arg17[%c0_50, %c0_51, %c0_52] : memref<4x8x1xf32, #tpu.memory_space<vmem>>, vector<4x8x1xf32>
      tpu.vector_store %arg17[%c0_50, %c0_51, %c0_52], %65 {strides = array<i32>} : memref<4x8x1xf32, #tpu.memory_space<vmem>>, vector<4x8x1xf32>,
      %cst_53 = arith.constant 0.000000e+00 : f32
      %67 = vector.broadcast %cst_53 : f32 to vector<4x8x1xf32>
      %c0_54 = arith.constant 0 : index
      %c0_55 = arith.constant 0 : index
      %c0_56 = arith.constant 0 : index
      %68 = vector.load %arg18[%c0_54, %c0_55, %c0_56] : memref<4x8x1xf32, #tpu.memory_space<vmem>>, vector<4x8x1xf32>
      tpu.vector_store %arg18[%c0_54, %c0_55, %c0_56], %67 {strides = array<i32>} : memref<4x8x1xf32, #tpu.memory_space<vmem>>, vector<4x8x1xf32>,
      %cst_57 = arith.constant 0.000000e+00 : f32
      %69 = vector.broadcast %cst_57 : f32 to vector<4x8x8xf32>
      %c0_58 = arith.constant 0 : index
      %c0_59 = arith.constant 0 : index
      %c0_60 = arith.constant 0 : index
      %70 = vector.load %arg16[%c0_58, %c0_59, %c0_60] : memref<4x8x8xf32, #tpu.memory_space<vmem>>, vector<4x8x8xf32>
      tpu.vector_store %arg16[%c0_58, %c0_59, %c0_60], %69 {strides = array<i32>} : memref<4x8x8xf32, #tpu.memory_space<vmem>>, vector<4x8x8xf32>,
    } else {
    }
    %c0 = arith.constant 0 : index
    %c0_4 = arith.constant 0 : index
    %c0_5 = arith.constant 0 : index
    %10 = vector.load %arg13[%c0, %c0_4, %c0_5] : memref<4x8x8xf32, #tpu.memory_space<vmem>>, vector<4x8x8xf32>
    %c0_6 = arith.constant 0 : index
    %11 = arith.index_cast %3 : i32 to index
    %c0_7 = arith.constant 0 : index
    %12 = vector.load %arg14[%c0_6, %11, %c0_7] : memref<4x8x8xf32, #tpu.memory_space<vmem>>, vector<4x8x8xf32>
    %c0_8 = arith.constant 0 : index
    %13 = arith.index_cast %3 : i32 to index
    %c0_9 = arith.constant 0 : index
    %14 = vector.load %arg15[%c0_8, %13, %c0_9] : memref<4x8x8xf32, #tpu.memory_space<vmem>>, vector<4x8x8xf32>
    "tpu.trace_start"() <{level = 10 : i32, message = "hqd,hkd->hqk"}> : () -> ()
    %cst = arith.constant dense<0.000000e+00> : vector<4x8x8xf32>
    %15 = tpu.matmul %10, %12, %cst {dimension_numbers = #tpu.dot_dimension_numbers<[2], [2], [1], [1], [0, 0, 0, 1, 1, 1], [0], [0]>} : vector<4x8x8xf32>, vector<4x8x8xf32>, vector<4x8x8xf32> -> vector<4x8x8xf32>
    "tpu.trace_stop"() : () -> ()
    %c0_10 = arith.constant 0 : index
    %c0_11 = arith.constant 0 : index
    %c0_12 = arith.constant 0 : index
    %16 = vector.load %arg17[%c0_10, %c0_11, %c0_12] : memref<4x8x1xf32, #tpu.memory_space<vmem>>, vector<4x8x1xf32>
    %cst_13 = arith.constant dense<0xFF800000> : vector<4x8xf32>
    %17 = vector.multi_reduction <maximumf>, %15, %cst_13 [2] : vector<4x8x8xf32> to vector<4x8xf32>
    %18 = vector.shape_cast %17 : vector<4x8xf32> to vector<4x8x1xf32>
    %19 = arith.maximumf %16, %18 : vector<4x8x1xf32>
    %20 = arith.subf %16, %19 : vector<4x8x1xf32>
    %21 = math.exp %20 : vector<4x8x1xf32>
    %22 = vector.broadcast %19 : vector<4x8x1xf32> to vector<4x8x8xf32>
    %23 = arith.subf %15, %22 : vector<4x8x8xf32>
    %24 = math.exp %23 : vector<4x8x8xf32>
    %c0_14 = arith.constant 0 : index
    %c0_15 = arith.constant 0 : index
    %c0_16 = arith.constant 0 : index
    %25 = vector.load %arg18[%c0_14, %c0_15, %c0_16] : memref<4x8x1xf32, #tpu.memory_space<vmem>>, vector<4x8x1xf32>
    %26 = arith.mulf %21, %25 : vector<4x8x1xf32>
    %cst_17 = arith.constant dense<0.000000e+00> : vector<4x8xf32>
    %27 = vector.multi_reduction <add>, %24, %cst_17 [2] : vector<4x8x8xf32> to vector<4x8xf32>
    %28 = vector.shape_cast %27 : vector<4x8xf32> to vector<4x8x1xf32>
    %29 = arith.addf %26, %28 : vector<4x8x1xf32>
    %c0_18 = arith.constant 0 : index
    %c0_19 = arith.constant 0 : index
    %c0_20 = arith.constant 0 : index
    %30 = vector.load %arg18[%c0_18, %c0_19, %c0_20] : memref<4x8x1xf32, #tpu.memory_space<vmem>>, vector<4x8x1xf32>
    tpu.vector_store %arg18[%c0_18, %c0_19, %c0_20], %29 {strides = array<i32>} : memref<4x8x1xf32, #tpu.memory_space<vmem>>, vector<4x8x1xf32>,
    %c0_21 = arith.constant 0 : index
    %c0_22 = arith.constant 0 : index
    %c0_23 = arith.constant 0 : index
    %31 = vector.load %arg16[%c0_21, %c0_22, %c0_23] : memref<4x8x8xf32, #tpu.memory_space<vmem>>, vector<4x8x8xf32>
    %32 = vector.broadcast %21 : vector<4x8x1xf32> to vector<4x8x8xf32>
    %33 = arith.mulf %32, %31 : vector<4x8x8xf32>
    "tpu.trace_start"() <{level = 10 : i32, message = "hqk,hkd->hqd"}> : () -> ()
    %cst_24 = arith.constant dense<0.000000e+00> : vector<4x8x8xf32>
    %34 = tpu.matmul %24, %14, %cst_24 {dimension_numbers = #tpu.dot_dimension_numbers<[2], [1], [1], [2], [0, 0, 0, 1, 1, 2], [0], [0]>} : vector<4x8x8xf32>, vector<4x8x8xf32>, vector<4x8x8xf32> -> vector<4x8x8xf32>
    "tpu.trace_stop"() : () -> ()
    %35 = arith.addf %33, %34 : vector<4x8x8xf32>
    %c0_25 = arith.constant 0 : index
    %c0_26 = arith.constant 0 : index
    %c0_27 = arith.constant 0 : index
    %36 = vector.load %arg16[%c0_25, %c0_26, %c0_27] : memref<4x8x8xf32, #tpu.memory_space<vmem>>, vector<4x8x8xf32>
    tpu.vector_store %arg16[%c0_25, %c0_26, %c0_27], %35 {strides = array<i32>} : memref<4x8x8xf32, #tpu.memory_space<vmem>>, vector<4x8x8xf32>,
    %c0_28 = arith.constant 0 : index
    %c0_29 = arith.constant 0 : index
    %c0_30 = arith.constant 0 : index
    %37 = vector.load %arg17[%c0_28, %c0_29, %c0_30] : memref<4x8x1xf32, #tpu.memory_space<vmem>>, vector<4x8x1xf32>
    tpu.vector_store %arg17[%c0_28, %c0_29, %c0_30], %19 {strides = array<i32>} : memref<4x8x1xf32, #tpu.memory_space<vmem>>, vector<4x8x1xf32>,
    %c0_i32_31 = arith.constant 0 : i32
    %38 = arith.cmpi eq, %arg2, %c0_i32_31 : i32
    %39 = arith.extui %38 : i1 to i32
    %c0_i32_32 = arith.constant 0 : i32
    %40 = arith.cmpi ne, %39, %c0_i32_32 : i32
    scf.if %40 {
      %c0_33 = arith.constant 0 : index
      %c0_34 = arith.constant 0 : index
      %c0_35 = arith.constant 0 : index
      %41 = vector.load %arg18[%c0_33, %c0_34, %c0_35] : memref<4x8x1xf32, #tpu.memory_space<vmem>>, vector<4x8x1xf32>
      %42 = tpu.reciprocal %41 {approx = true} : vector<4x8x1xf32> -> vector<4x8x1xf32>
      %c0_36 = arith.constant 0 : index
      %c0_37 = arith.constant 0 : index
      %c0_38 = arith.constant 0 : index
      %43 = vector.load %arg16[%c0_36, %c0_37, %c0_38] : memref<4x8x8xf32, #tpu.memory_space<vmem>>, vector<4x8x8xf32>
      %44 = vector.broadcast %42 : vector<4x8x1xf32> to vector<4x8x8xf32>
      %45 = arith.mulf %43, %44 : vector<4x8x8xf32>
      %46 = vector.extract_strided_slice %45 {offsets = [0, 0, 0], sizes = [1, 8, 8], strides = [1, 1, 1]} : vector<4x8x8xf32> to vector<1x8x8xf32>
      %47 = vector.shape_cast %46 : vector<1x8x8xf32> to vector<8x8xf32>
      %c0_39 = arith.constant 0 : index
      %c0_40 = arith.constant 0 : index
      %48 = vector.load %arg19[%c0_39, %c0_40] : memref<8x32xf32, #tpu.memory_space<vmem>>, vector<8x8xf32>
      tpu.vector_store %arg19[%c0_39, %c0_40], %47 {strides = array<i32>} : memref<8x32xf32, #tpu.memory_space<vmem>>, vector<8x8xf32>,
      %49 = vector.extract_strided_slice %45 {offsets = [1, 0, 0], sizes = [1, 8, 8], strides = [1, 1, 1]} : vector<4x8x8xf32> to vector<1x8x8xf32>
      %50 = vector.shape_cast %49 : vector<1x8x8xf32> to vector<8x8xf32>
      %c0_41 = arith.constant 0 : index
      %c8 = arith.constant 8 : index
      %51 = vector.load %arg19[%c0_41, %c8] : memref<8x32xf32, #tpu.memory_space<vmem>>, vector<8x8xf32>
      tpu.vector_store %arg19[%c0_41, %c8], %50 {strides = array<i32>} : memref<8x32xf32, #tpu.memory_space<vmem>>, vector<8x8xf32>,
      %52 = vector.extract_strided_slice %45 {offsets = [2, 0, 0], sizes = [1, 8, 8], strides = [1, 1, 1]} : vector<4x8x8xf32> to vector<1x8x8xf32>
      %53 = vector.shape_cast %52 : vector<1x8x8xf32> to vector<8x8xf32>
      %c0_42 = arith.constant 0 : index
      %c16 = arith.constant 16 : index
      %54 = vector.load %arg19[%c0_42, %c16] : memref<8x32xf32, #tpu.memory_space<vmem>>, vector<8x8xf32>
      tpu.vector_store %arg19[%c0_42, %c16], %53 {strides = array<i32>} : memref<8x32xf32, #tpu.memory_space<vmem>>, vector<8x8xf32>,
      %55 = vector.extract_strided_slice %45 {offsets = [3, 0, 0], sizes = [1, 8, 8], strides = [1, 1, 1]} : vector<4x8x8xf32> to vector<1x8x8xf32>
      %56 = vector.shape_cast %55 : vector<1x8x8xf32> to vector<8x8xf32>
      %c0_43 = arith.constant 0 : index
      %c24 = arith.constant 24 : index
      %57 = vector.load %arg19[%c0_43, %c24] : memref<8x32xf32, #tpu.memory_space<vmem>>, vector<8x8xf32>
      tpu.vector_store %arg19[%c0_43, %c24], %56 {strides = array<i32>} : memref<8x32xf32, #tpu.memory_space<vmem>>, vector<8x8xf32>,
      %c0_44 = arith.constant 0 : index
      %c0_45 = arith.constant 0 : index
      %58 = vector.load %arg19[%c0_44, %c0_45] : memref<8x32xf32, #tpu.memory_space<vmem>>, vector<8x32xf32>
      %c0_46 = arith.constant 0 : index
      %c0_47 = arith.constant 0 : index
      %59 = vector.load %arg10[%c0_46, %c0_47] : memref<32x32xf32, #tpu.memory_space<vmem>>, vector<32x32xf32>
      %cst_48 = arith.constant dense<0.000000e+00> : vector<8x32xf32>
      %60 = tpu.matmul %58, %59, %cst_48 {dimension_numbers = #tpu.dot_dimension_numbers<[1], [0], [0], [1], [0, 0, 1, 1], [], []>} : vector<8x32xf32>, vector<32x32xf32>, vector<8x32xf32> -> vector<8x32xf32>
      %c0_49 = arith.constant 0 : index
      %c0_50 = arith.constant 0 : index
      %61 = vector.load %arg11[%c0_49, %c0_50] : memref<1x32xf32, #tpu.memory_space<vmem>>, vector<1x32xf32>
      %62 = vector.broadcast %61 : vector<1x32xf32> to vector<8x32xf32>
      %63 = arith.addf %60, %62 : vector<8x32xf32>
      %c0_51 = arith.constant 0 : index
      %c0_52 = arith.constant 0 : index
      %c0_53 = arith.constant 0 : index
      %64 = vector.load %arg12[%c0_51, %c0_52, %c0_53] : memref<1x8x32xf32, #tpu.memory_space<vmem>>, vector<1x8x32xf32>
      %65 = vector.shape_cast %64 : vector<1x8x32xf32> to vector<8x32xf32>
      %66 = vector.shape_cast %63 : vector<8x32xf32> to vector<1x8x32xf32>
      tpu.vector_store %arg12[%c0_51, %c0_52, %c0_53], %66 {strides = array<i32>} : memref<1x8x32xf32, #tpu.memory_space<vmem>>, vector<1x8x32xf32>,
    } else {
    }
    return
  }
  func.func @transform_0(%arg0: i32, %arg1: i32, %arg2: i32) -> (i32, i32, i32) {
    %c0_i32 = arith.constant 0 : i32
    %c0_i32_0 = arith.constant 0 : i32
    %c0_i32_1 = arith.constant 0 : i32
    return %arg0, %c0_i32, %c0_i32_0 : i32, i32, i32
  }
  func.func @transform_1(%arg0: i32, %arg1: i32, %arg2: i32) -> (i32, i32) {
    %c0_i32 = arith.constant 0 : i32
    %c0_i32_0 = arith.constant 0 : i32
    %c0_i32_1 = arith.constant 0 : i32
    return %c0_i32, %c0_i32_0 : i32, i32
  }
  func.func @transform_2(%arg0: i32, %arg1: i32, %arg2: i32) -> (i32, i32) {
    %c0_i32 = arith.constant 0 : i32
    %c0_i32_0 = arith.constant 0 : i32
    %c0_i32_1 = arith.constant 0 : i32
    return %c0_i32, %c0_i32_0 : i32, i32
  }
  func.func @transform_3(%arg0: i32, %arg1: i32, %arg2: i32) -> (i32, i32) {
    %c0_i32 = arith.constant 0 : i32
    %c0_i32_0 = arith.constant 0 : i32
    %c0_i32_1 = arith.constant 0 : i32
    return %c0_i32, %c0_i32_0 : i32, i32
  }
  func.func @transform_4(%arg0: i32, %arg1: i32, %arg2: i32) -> (i32, i32) {
    %c0_i32 = arith.constant 0 : i32
    %c0_i32_0 = arith.constant 0 : i32
    %c0_i32_1 = arith.constant 0 : i32
    return %c0_i32, %c0_i32_0 : i32, i32
  }
  func.func @transform_5(%arg0: i32, %arg1: i32, %arg2: i32) -> (i32, i32) {
    %c0_i32 = arith.constant 0 : i32
    %c0_i32_0 = arith.constant 0 : i32
    %c0_i32_1 = arith.constant 0 : i32
    return %c0_i32, %c0_i32_0 : i32, i32
  }
  func.func @transform_6(%arg0: i32, %arg1: i32, %arg2: i32) -> (i32, i32) {
    %c0_i32 = arith.constant 0 : i32
    %c0_i32_0 = arith.constant 0 : i32
    %c0_i32_1 = arith.constant 0 : i32
    return %c0_i32, %c0_i32_0 : i32, i32
  }
  func.func @transform_7(%arg0: i32, %arg1: i32, %arg2: i32) -> (i32, i32) {
    %c0_i32 = arith.constant 0 : i32
    %c0_i32_0 = arith.constant 0 : i32
    %c0_i32_1 = arith.constant 0 : i32
    return %c0_i32, %c0_i32_0 : i32, i32
  }
  func.func @transform_8(%arg0: i32, %arg1: i32, %arg2: i32) -> (i32, i32) {
    %c0_i32 = arith.constant 0 : i32
    %c0_i32_0 = arith.constant 0 : i32
    %c0_i32_1 = arith.constant 0 : i32
    return %c0_i32, %c0_i32_0 : i32, i32
  }
  func.func @transform_9(%arg0: i32, %arg1: i32, %arg2: i32) -> (i32, i32, i32) {
    %c0_i32 = arith.constant 0 : i32
    %c0_i32_0 = arith.constant 0 : i32
    return %arg0, %arg1, %c0_i32 : i32, i32, i32
  }
}

</mosaic_0001>

<bundles_post_ra>
// kernel: tpu_custom_call.1
= control target key start
LH: loop header
LB: loop body
LE: loop exit
PB: predicated region body
PF: predicated region fallthrough
CT: control target
= control target key end

     0   :  { %s2938_s0 = inlined_call_operand.hbm [shape: f32[2,8,32], index: 0, kind: input, shape index: {}]   ;;  %s2939_s1 = inlined_call_operand.hbm [shape: f32[32,32], index: 1, kind: input, shape index: {}]   ;;  %s2940_s2 = inlined_call_operand.hbm [shape: f32[32,32], index: 2, kind: input, shape index: {}]   ;;  %s2941_s3 = inlined_call_operand.hbm [shape: f32[32,32], index: 3, kind: input, shape index: {}]   ;;  %s2942_s4 = inlined_call_operand.vmem [shape: f32[1,32], index: 4, kind: input, shape index: {}]   ;;  %s2943_s5 = inlined_call_operand.vmem [shape: f32[1,32], index: 5, kind: input, shape index: {}]   ;;  %s2944_s6 = inlined_call_operand.vmem [shape: f32[1,32], index: 6, kind: input, shape index: {}]   ;;  %s2945_s7 = inlined_call_operand.hbm [shape: f32[32,32], index: 7, kind: input, shape index: {}]   ;;  %s2946_s8 = inlined_call_operand.vmem [shape: f32[1,32], index: 8, kind: input, shape index: {}]   ;;  %s2947_s9 = inlined_call_operand.hbm [shape: f32[2,8,32], index: 9, kind: output, shape index: {}]  }
   0x1   :  { %2954 = sst [smem:[#allocation24_spill]] %s2939_s1 }
   0x2   :  { %2955 = sst [smem:[#allocation25_spill]] %s2946_s8 }
   0x3   :  { %2956 = sst [smem:[#allocation26_spill]] %s2947_s9 }
   0x4   :  { %14 = vsyncpa [#allocation10], 0 }
   0x5   :  { %16 = vsyncpa [#allocation10 + $0x1], 0 }
   0x6   :  { %17 = vsyncpa [#allocation13], 0 }
   0x7   :  { %18 = vsyncpa [#allocation16], 0 }
   0x8   :  { %19 = vsyncpa [#allocation11], 0 }
   0x9   :  { %21 = vsyncpa [#allocation11 + $0x1], 0  ;;  %s2453_s30 = smov 0   ;;  %s2455_s10 = smov 0  }
   0xa   :  { %s2457_s11 = smov 0   ;;  %s2459_s12 = smov 0  }
   0xb   :  { %s2461_s13 = smov 0   ;;  %s2463_s14 = smov 0  }
   0xc LB: > { %2957 = sst [smem:[#allocation23_spill]] %s2374_s12  ;;  %s2948_s15 = sadd.s32 4294967295, %s2382_s14   ;;  %s2382_s14 = sphi %s2463_s14, %s27_s14   ;;  %s2378_s13 = sphi %s2461_s13, %s2982_s13   ;;  %s2374_s12 = sphi %s2459_s12, %s2981_s12   ;;  %s2370_s11 = sphi %s2457_s11, %s2980_s11   ;;  %s2366_s10 = sphi %s2455_s10, %s2979_s10   ;;  %s2362_s30 = sphi %s2453_s30, %s2978_s30  }
   0xd   : > { %p1819_p0 = scmp.ge.s32.totalorder %s2382_s14, 1  ;;  %p2487_p1 = scmp.eq.s32.totalorder %s2948_s15, 0 }
   0xe   : > { %p273_p2 = scmp.lt.s32.totalorder %s2382_s14, 3  ;;  %s2384_s18 = smov [#allocation12]  }
   0xf   : > { %s2958_s16 = scalar_select %p2487_p1, 1, 0 }
  0x10   : > { %p2492_p3 = pnand %p1819_p0, %p273_p2  ;;  %s285_s19 = sshll.u32 %s2384_s18, 4  ;;  %s2496_s19 = int_to_ptr.vmem [resolvable:$true] %s285_s19 }
  0x11   : > { %s2385_s21 = smov [#allocation15]   ;;  %s2386_s23 = smov [#allocation14]  }
  0x12   : > { %s2959_s17 = scalar_select %p2492_p3, 1, 0 }
  0x13   : > { %p2028_p4 = pneg %p2492_p3  ;;  %s311_s22 = sshll.u32 %s2385_s21, 4  ;;  %s2507_s22 = int_to_ptr.vmem [resolvable:$true] %s311_s22 }
  0x14   : > { %s2509_s24 = sshll.u32 %s2386_s23, 4  ;;  %s2961_s1 = sld [smem:[#allocation24_spill]]  ;;  %s299_s24 = int_to_ptr.vmem [resolvable:$true] %s2509_s24 }
  0x15   : > { %p2503_p6 = pnand %p2028_p4, %p2487_p1 }
  0x17   : > { %p2519_p8 = pneg %p2503_p6 }
  0x1a   : > { %s2150_s27 = scalar_lea.hbm %s2961_s1, 512 }
  0x1b   : > { %p2151_p7 = scmp.ne.s32.totalorder %s2961_s1, %s2150_s27  ;;  %p2157_p11 = scmp.lt.u32.totalorder %s2150_s27, %s2961_s1 }
  0x1d   : > { %p2153_p9 = pnand %p2519_p8, %p2151_p7 }
  0x1f   : > { %p2154_p10 = pneg %p2153_p9 }
  0x21   : > { %p2159_p12 = pnand %p2157_p11, %p2154_p10 }
  0x23   : > { %2162 = shalt.err (!%p2159_p12)
}
  0x24   : > { %s2163_s25 = scalar_lea.vmem %s2496_s19, 512  ;;  %p2171_p4 = scmp.lt.s32.totalorder %s2496_s19, %s2496_s19 }
  0x25   : > { %p2164_p13 = scmp.ne.s32.totalorder %s2496_s19, %s2163_s25  ;;  %p2172_p5 = scmp.lt.s32.totalorder %s2163_s25, %s2163_s25 }
  0x27   : > { %p2166_p0 = pnand %p2164_p13, %p2519_p8  ;;  %p2173_p7 = por %p2172_p5, %p2171_p4 }
  0x29   : > { %p2167_p2 = pneg %p2166_p0 }
  0x2b   : > { %p2174_p9 = pnand %p2173_p7, %p2167_p2 }
  0x2d   : > { %2177 = shalt.err (!%p2174_p9)
}
  0x2e   : > { %s2387_s26 = smov 128   ;;  %s2388_s27 = smov 8  }
  0x2f   : > { %2031 = dma.hbm_to_vmem [thread:$0]  (!%p2503_p6), %s2961_s1, 512, %s2496_s19, [#allocation13], %s2387_s26, %s2387_s26, %s2388_s27  }
  0x30   : > { %s2178_s25 = scalar_lea.hbm %s2941_s3, 512 }
  0x31   : > { %p2179_p5 = scmp.ne.s32.totalorder %s2941_s3, %s2178_s25  ;;  %p2185_p12 = scmp.lt.u32.totalorder %s2178_s25, %s2941_s3 }
  0x33   : > { %p2181_p10 = pnand %p2179_p5, %p2519_p8 }
  0x35   : > { %p2182_p11 = pneg %p2181_p10 }
  0x37   : > { %p2187_p13 = pnand %p2185_p12, %p2182_p11 }
  0x39   : > { %2190 = shalt.err (!%p2187_p13)
}
  0x3a   : > { %s2191_s19 = scalar_lea.vmem %s2507_s22, 512  ;;  %p2199_p7 = scmp.lt.s32.totalorder %s2507_s22, %s2507_s22 }
  0x3b   : > { %p2192_p0 = scmp.ne.s32.totalorder %s2507_s22, %s2191_s19  ;;  %p2200_p9 = scmp.lt.s32.totalorder %s2191_s19, %s2191_s19 }
  0x3d   : > { %p2194_p2 = pnand %p2192_p0, %p2519_p8  ;;  %p2201_p5 = por %p2200_p9, %p2199_p7 }
  0x3f   : > { %p2195_p4 = pneg %p2194_p2 }
  0x41   : > { %p2202_p10 = pnand %p2201_p5, %p2195_p4 }
  0x43   : > { %2205 = shalt.err (!%p2202_p10)
}
  0x44   : > { %2037 = dma.hbm_to_vmem [thread:$0]  (!%p2503_p6), %s2941_s3, 512, %s2507_s22, [#allocation16], %s2387_s26, %s2387_s26, %s2388_s27  }
  0x45   : > { %s2206_s28 = scalar_lea.hbm %s2940_s2, 512 }
  0x46   : > { %p2207_p11 = scmp.ne.s32.totalorder %s2940_s2, %s2206_s28  ;;  %p2213_p0 = scmp.lt.u32.totalorder %s2206_s28, %s2940_s2 }
  0x48   : > { %p2209_p12 = pnand %p2207_p11, %p2519_p8 }
  0x4a   : > { %p2210_p13 = pneg %p2209_p12 }
  0x4c   : > { %p2215_p2 = pnand %p2213_p0, %p2210_p13 }
  0x4e   : > { %2218 = shalt.err (!%p2215_p2)
}
  0x4f   : > { %s2219_s19 = scalar_lea.vmem %s299_s24, 512  ;;  %p2227_p5 = scmp.lt.s32.totalorder %s299_s24, %s299_s24 }
  0x50   : > { %p2220_p4 = scmp.ne.s32.totalorder %s299_s24, %s2219_s19  ;;  %p2228_p10 = scmp.lt.s32.totalorder %s2219_s19, %s2219_s19 }
  0x52   : > { %p2222_p7 = pnand %p2220_p4, %p2519_p8  ;;  %p2229_p3 = por %p2228_p10, %p2227_p5 }
  0x54   : > { %p2223_p9 = pneg %p2222_p7 }
  0x56   : > { %p2230_p1 = pnand %p2229_p3, %p2223_p9 }
  0x58   : > { %2233 = shalt.err (!%p2230_p1)
}
  0x59   : > { %2034 = dma.hbm_to_vmem [thread:$0]  (!%p2503_p6), %s2940_s2, 512, %s299_s24, [#allocation13], %s2387_s26, %s2387_s26, %s2388_s27  }
  0x5a   : > { %s2389_s9 = smov [#allocation17]   ;;  %s2234_s29 = scalar_lea.hbm %s2945_s7, 512 }
  0x5b   : > { %s333_s12 = sshll.u32 %s2389_s9, 4  ;;  %p2235_p1 = scmp.ne.s32.totalorder %s2945_s7, %s2234_s29  ;;  %s334_s12 = int_to_ptr.vmem [resolvable:$true] %s333_s12 }
  0x5c   : > { %p2241_p12 = scmp.lt.u32.totalorder %s2234_s29, %s2945_s7 }
  0x5d   : > { %p2237_p3 = pnand %p2235_p1, %p2519_p8 }
  0x5f   : > { %p2238_p11 = pneg %p2237_p3 }
  0x61   : > { %p2243_p13 = pnand %p2241_p12, %p2238_p11 }
  0x63   : > { %2246 = shalt.err (!%p2243_p13)
}
  0x64   : > { %s2247_s24 = scalar_lea.vmem %s334_s12, 512  ;;  %p2255_p7 = scmp.lt.s32.totalorder %s334_s12, %s334_s12 }
  0x65   : > { %p2248_p0 = scmp.ne.s32.totalorder %s334_s12, %s2247_s24  ;;  %p2256_p9 = scmp.lt.s32.totalorder %s2247_s24, %s2247_s24 }
  0x67   : > { %p2250_p2 = pnand %p2248_p0, %p2519_p8  ;;  %p2257_p5 = por %p2256_p9, %p2255_p7 }
  0x69   : > { %p2251_p4 = pneg %p2250_p2 }
  0x6b   : > { %p2258_p10 = pnand %p2257_p5, %p2251_p4 }
  0x6d   : > { %2261 = shalt.err (!%p2258_p10)
}
  0x6e   : > { %2040 = dma.hbm_to_vmem [thread:$0]  (!%p2503_p6), %s2945_s7, 512, %s334_s12, [#allocation16], %s2387_s26, %s2387_s26, %s2388_s27  }
  0x6f   : > { %s1818_s20 = sadd.s32 4294967294, %s2382_s14   ;;  %s46_s18 = sadd.s32 1, %s2378_s13 }
  0x70   : > { %p48_p8 = scmp.ge.s32.totalorder %s46_s18, 2  ;;  %s53_s9 = sadd.s32 1, %s2370_s11 }
  0x71   : > { %p60_p1 = scmp.ne.s32.totalorder %s2370_s11, %s2366_s10  ;;  %p61_p3 = scmp.eq.s32.totalorder %s2382_s14, 0 }
  0x72   : > { %s2984_s18 = smov (%p48_p8, %s46_s18), 0  ;;  %p66_p12 = scmp.ne.s32.totalorder %s2366_s10, %s2362_s30 }
  0x73   : > { %p2620_p11 = por %p61_p3, %p60_p1  ;;  %s50_s26 = ssub.s32 %s2378_s13, %s2984_s18 }
  0x74   : > { %s2964_s27 = sadd.s32 4294967295, %s2382_s14   ;;  %p51_p13 = scmp.eq.s32.totalorder %s50_s26, 0 }
  0x75   : > { %p260_p6 = scmp.eq.s32.totalorder %s2964_s27, 1  ;;  %p2965_p0 = scmp.ne.s32.totalorder %s2958_s16, 0 }
  0x76   : > { %p266_p7 = scmp.eq.s32.totalorder %s1818_s20, 1  ;;  %p2053_p5 = scmp.lt.s32.totalorder %s2382_s14, 2 }
  0x77   : > { %p2632_p2 = por %p2965_p0, %p66_p12  ;;  %p2636_p4 = por %p260_p6, %p60_p1 }
  0x78   : > { %s2641_s29 = scalar_select %p51_p13, %s2370_s11, %s53_s9  }
  0x79   : > { %s2967_s28 = scalar_select %p2636_p4, 1, 0 }
  0x7a   : > { %p2643_p9 = por %p266_p7, %p66_p12  ;;  %s350_s23 = sand.u32 1, %s2370_s11  }
  0x7b   : > { %s1826_s25 = sshll.u32 %s2378_s13, 7  ;;  %s1825_s19 = sshll.u32 %s350_s23, 3 }
  0x7c   : > { %s2968_s21 = scalar_select %p2643_p9, 1, 0 }
  0x7d   : > { %s2653_s8 = scalar_lea.hbm %s2938_s0, %s1826_s25  ;;  %s354_s20 = scalar_lea.vmem [#allocation9], %s1825_s19 }
  0x7e   : > { %s361_s9 = sshll.u32 %s354_s20, 4  ;;  %p2657_p10 = pnand %p2053_p5, %p2620_p11  ;;  %s2661_s9 = int_to_ptr.vmem [resolvable:$true] %s361_s9 }
  0x7f   : > { %s351_s27 = scalar_lea.sflag [#allocation10], %s350_s23  ;;  %s2262_s1 = scalar_lea.hbm %s2653_s8, 128 }
  0x80   : > { %p2263_p8 = scmp.ne.s32.totalorder %s2653_s8, %s2262_s1  ;;  %p2264_p1 = pneg %p2657_p10 }
  0x81   : > { %s2267_s15 = scalar_lea.hbm %s2938_s0, 256  ;;  %p2268_p11 = scmp.lt.u32.totalorder %s2653_s8, %s2938_s0 }
  0x82   : > { %p2265_p3 = pnand %p2264_p1, %p2263_p8  ;;  %p2269_p6 = scmp.lt.u32.totalorder %s2267_s15, %s2262_s1 }
  0x83   : > { %p2271_p0 = scmp.lt.u32.totalorder %s2262_s1, %s2653_s8 }
  0x84   : > { %p2266_p12 = pneg %p2265_p3  ;;  %p2270_p13 = por %p2269_p6, %p2268_p11 }
  0x86   : > { %p2272_p7 = por %p2271_p0, %p2270_p13 }
  0x88   : > { %p2273_p5 = pnand %p2272_p7, %p2266_p12 }
  0x8a   : > { %2276 = shalt.err (!%p2273_p5)
}
  0x8b   : > { %s2277_s23 = scalar_lea.vmem %s2661_s9, 128  ;;  %s2390_s20 = smov [#allocation9]  }
  0x8c   : > { %p2278_p8 = scmp.ne.s32.totalorder %s2661_s9, %s2277_s23  ;;  %s2282_s25 = sshll.u32 %s2390_s20, 4  ;;  %s2283_s25 = int_to_ptr.vmem [resolvable:$false] %s2282_s25 }
  0x8d   : > { %s2284_s19 = scalar_lea.vmem %s2283_s25, 256  ;;  %p2285_p4 = scmp.lt.s32.totalorder %s2661_s9, %s2283_s25 }
  0x8e   : > { %p2280_p3 = pnand %p2278_p8, %p2264_p1  ;;  %p2286_p11 = scmp.lt.s32.totalorder %s2284_s19, %s2277_s23 }
  0x90   : > { %p2281_p9 = pneg %p2280_p3  ;;  %p2287_p6 = por %p2286_p11, %p2285_p4 }
  0x92   : > { %p2288_p13 = pnand %p2287_p6, %p2281_p9 }
  0x94   : > { %2291 = shalt.err (!%p2288_p13)
}
  0x95   : > { %2044 = dma.hbm_to_vmem [thread:$0]  (!%p2657_p10), %s2653_s8, 128, %s2661_s9, %s351_s27  }
  0x96   : > { %p2970_p12 = scmp.ne.s32.totalorder %s2959_s17, 0 }
  0x97   : > { %s2691_s1 = sand.u32 (!%p2970_p12), 1, %s2366_s10  }
  0x98   : > { %370 = sbr.rel (%p2970_p12) target bundleno = 1674 (0x68a), region = 56  ;;  %s1828_s15 = sshll.u32 (!%p2970_p12), %s2691_s1, 3 }
  0x99   : > { %s373_s24 = scalar_lea.sflag (!%p2970_p12), [#allocation10], %s2691_s1  ;;  %s376_s22 = scalar_lea.vmem (!%p2970_p12), [#allocation9], %s1828_s15 }
  0x9f   : > { %2345 = dma.done.wait (%p2632_p2), %s373_s24, 128  }
  0xa0   : > { %2347 = vsyncadd (%p2632_p2), %s373_s24, 4294967168  ;;  %p2971_p4 = scmp.ne.s32.totalorder %s2958_s16, 0 }
  0xa2   : > { %2349 = dma.done.wait (%p2971_p4), [#allocation13], 1024  }
  0xa3   : > { %2351 = vsyncadd (%p2971_p4), [#allocation13], 4294966272 }
  0xa4   : > { %2353 = dma.done.wait (%p2971_p4), [#allocation16], 1024  }
  0xa5   : > { %2355 = vsyncadd (%p2971_p4), [#allocation16], 4294966272  ;;  %v2391_v0 = vmov 0.0|0.0   ;;  %vm2392_vm0 = vmmov 0   ;;  %v2393_v1 = vmov 0.0   ;;  %v435_v2 = vld [vmem:[#allocation14] sm:$0xff] }
  0xa6   : > { %1984 = vmatprep.subr.bf16.mxu0 %v2391_v0  ;;  %1908 = vmatprep.mubr.msk.f32.mxu0 %vm2392_vm0, %v2393_v1  ;;  %v436_v3 = vld [vmem:[#allocation14 + $0x8] sm:$0xff]  ;;  %v437_v4 = vld [vmem:[#allocation14 + $0x10] sm:$0xff]  ;;  %v438_v6 = vld [vmem:[#allocation14 + $0x18] sm:$0xff]  ;;  %vm446_vm1 = vcmask 261120   ;;  %vm602_vm2 = vcmask 64512   ;;  %s2394_s12 = smov 112  }
  0xa7   : > { %1990 = vmatprep.subr.bf16.mxu1 %v2391_v0  ;;  %1919 = vmatprep.mubr.msk.f32.mxu1 %vm2392_vm0, %v2393_v1  ;;  %v1985_v5 = vpack.c.bf16 %v436_v3, %v435_v2  ;;  %v1988_v7 = vpack.c.bf16 %v438_v6, %v437_v4  ;;  %v520_v8 = vld [vmem:[#allocation15] sm:$0xff]  ;;  %v521_v9 = vld [vmem:[#allocation15 + $0x8] sm:$0xff]  ;;  %v434_v13 = vld [vmem:[%s376_s22] sm:$0xff]  ;;  %759 = vst.msk [vmem:[#allocation5] sm:$0xff] %vm602_vm2, %v2393_v1  ;;  %s2395_s8 = smov 120   ;;  %s2396_s27 = smov 104  }
  0xa8   : > { %v647_v10 = vld [vmem:[#allocation12] sm:$0xff]  ;;  %v648_v11 = vld [vmem:[#allocation12 + $0x8] sm:$0xff]  ;;  %v1991_v12 = vpack.c.bf16 %v521_v9, %v520_v8  ;;  %v649_v15 = vld [vmem:[#allocation12 + $0x10] sm:$0xff]  ;;  %760 = vst.msk [vmem:[#allocation5 + $0x8] sm:$0xff] %vm602_vm2, %v2393_v1  ;;  %vm750_vm3 = vcmask 7168   ;;  %v2397_v48 = vmov -inf  }
  0xa9   : > { %1986 = vmatpush3.bf16.msra.mxu0 %v1985_v5  ;;  %v1997_v14 = vpack.c.bf16 %v648_v11, %v647_v10  ;;  %v650_v16 = vld [vmem:[#allocation12 + $0x18] sm:$0xff]  ;;  %v522_v18 = vld [vmem:[#allocation15 + $0x10] sm:$0xff]  ;;  %761 = vst.msk [vmem:[#allocation5 + $0x10] sm:$0xff] %vm602_vm2, %v2393_v1  ;;  %762 = vst.msk [vmem:[#allocation5 + $0x18] sm:$0xff] %vm602_vm2, %v2393_v1  ;;  %v2398_v52 = vmov 0   ;;  %s2399_s25 = smov 8  }
  0xaa   : > { %1987 = vmatprep.subr.bf16.mxu0 %v2391_v0  ;;  %1992 = vmatpush3.bf16.msra.mxu1 %v1991_v12  ;;  %v2000_v17 = vpack.c.bf16 %v650_v16, %v649_v15  ;;  %v523_v19 = vld [vmem:[#allocation15 + $0x18] sm:$0xff]  ;;  %v1834_v21 = vld [vmem:[%s2943_s5] ss:$0 sm:$0xff]  ;;  %751 = vst.msk [vmem:[#allocation6] sm:$0xff] %vm750_vm3, %v2397_v48  ;;  %752 = vst.msk [vmem:[#allocation6 + $0x8] sm:$0xff] %vm750_vm3, %v2397_v48  ;;  %s2400_s19 = smov 16  }
  0xab   : > { %1993 = vmatprep.subr.bf16.mxu1 %v2391_v0  ;;  %v1994_v20 = vpack.c.bf16 %v523_v19, %v522_v18  ;;  %v1844_v25 = vld [vmem:[%s2942_s4] ss:$0 sm:$0xff]  ;;  %753 = vst.msk [vmem:[#allocation6 + $0x10] sm:$0xff] %vm750_vm3, %v2397_v48  ;;  %754 = vst.msk [vmem:[#allocation6 + $0x18] sm:$0xff] %vm750_vm3, %v2397_v48  ;;  %2124 = vset.pattern.permute.xlu1 %v2398_v52  ;;  %s2401_s24 = smov 24   ;;  %s2972_s22 = sld [smem:[#allocation23_spill]] }
  0xac   : > { %v1836_v31 = vld [vmem:[%s2944_s6] ss:$0 sm:$0xff]  ;;  %755 = vst.msk [vmem:[#allocation7] sm:$0xff] %vm750_vm3, %v2393_v1  ;;  %756 = vst.msk [vmem:[#allocation7 + $0x8] sm:$0xff] %vm750_vm3, %v2393_v1  ;;  %2125 = vset.pattern.permute.xlu0 %v2398_v52  ;;  %vm1551_vm4 = vcmask 130112   ;;  %vm1557_vm5 = vcmask 195712  }
  0xad   : > { %1989 = vmatpush3.bf16.msra.mxu0 %v1988_v7  ;;  %757 = vst.msk [vmem:[#allocation7 + $0x10] sm:$0xff] %vm750_vm3, %v2393_v1  ;;  %758 = vst.msk [vmem:[#allocation7 + $0x18] sm:$0xff] %vm750_vm3, %v2393_v1  ;;  %vm1563_vm6 = vcmask 261312   ;;  %s426_s9 = scalar_lea.vmem [#allocation18], %s1828_s15  ;;  %s2974_s20 = sld [smem:[#allocation26_spill]] }
  0xae   : > { %1996 = vmatprep.subr.bf16.mxu0 %v2391_v0  ;;  %1995 = vmatpush3.bf16.msra.mxu1 %v1994_v20  ;;  %s1667_s26 = sshll.u32 %s426_s9, 4  ;;  %p2975_p9 = scmp.ne.s32.totalorder %s2967_s28, 0  ;;  %s2890_s26 = int_to_ptr.vmem [resolvable:$true] %s1667_s26 }
  0xaf   : > { %1933 = vmatprep.subr.mxu1 %v2393_v1  ;;  %s2402_s15 = smov [#allocation18]  }
  0xb0   : > { %1909 = vmatmul.mubr.msk.f32.vlgmr.msra.gmra.mrb[0].mxu0 %vm446_vm1, %v434_v13 }
  0xb1   : > { %1998 = vmatpush3.bf16.msra.mxu0 %v1997_v14  ;;  %1930 = vmatprep.mubr.msk.f32.mxu0 %vm2392_vm0, %v2393_v1  ;;  %v2802_v62 = vld [vmem:[#allocation6] sm:$0xff]  ;;  %v2812_v4 = vld [vmem:[#allocation6 + $0x8] sm:$0xff] }
  0xb2   : > { %1999 = vmatprep.subr.bf16.mxu0 %v2391_v0  ;;  %1920 = vmatmul.mubr.msk.f32.vlgmr.msra.gmra.mrb[0].mxu1 %vm446_vm1, %v434_v13  ;;  %v2817_v7 = vld [vmem:[#allocation6 + $0x10] sm:$0xff]  ;;  %v2827_v11 = vld [vmem:[#allocation6 + $0x18] sm:$0xff] }
  0xb3   : > { %1935 = vmatprep.mubr.msk.f32.mxu1 %vm2392_vm0, %v2393_v1 }
  0xb5   : > { %2001 = vmatpush3.bf16.msra.mxu0 %v2000_v17 }
  0xb6   : > { %1953 = vmatprep.subr.mxu0 %v2393_v1 }
  0xb8   : > { %1931 = vmatmul.mubr.msk.f32.vlgmr.msra.gmra.mrb[2].mxu0 %vm446_vm1, %v434_v13 }
  0xb9   : > { %1955 = vmatprep.mubr.msk.f32.mxu0 %vm2392_vm0, %v2393_v1 }
 0x183   : > { %v516_v22 = vpop.f32.mrb[0].mxu0 }
 0x184   : > { %v517_v23 = vadd.f32 %v1834_v21, %v516_v22  ;;  %v1910_v24 = vpop.f32.mrb[1].mxu0 }
 0x185   : > { %v597_v32 = vpop.f32.mrb[0].mxu1 }
 0x186   : > { %603 = vst.msk [vmem:[#allocation3] sm:$0xff] %vm602_vm2, %v517_v23  ;;  %619 = vrot.lane.b32.xlu1 %v517_v23, %s2394_s12  ;;  %607 = vrot.lane.b32.xlu0 %v517_v23, %s2395_s8  ;;  %v2760_v33 = vadd.f32 %v1836_v31, %v597_v32  ;;  %v1921_v34 = vpop.f32.mrb[1].mxu1 }
 0x188   : > { %605 = vst.msk [vmem:[#allocation4] sm:$0xff] %vm602_vm2, %v2760_v33 }
 0x18b   : > { %v728_v26 = vpop.f32.mrb[2].mxu0 }
 0x18c   : > { %v729_v27 = vadd.f32 %v1844_v25, %v728_v26  ;;  %v1932_v28 = vpop.f32.mrb[3].mxu0 }
 0x18d   : > { %v768_v29 = vld [vmem:[#allocation3] sm:$0xff] }
 0x18e   : > { %733 = vst.msk [vmem:[#allocation2] sm:$0xff] %vm602_vm2, %v729_v27  ;;  %740 = vrot.lane.b32.xlu1 %v729_v27, %s2394_s12  ;;  %735 = vrot.lane.b32.xlu0 %v729_v27, %s2395_s8 }
 0x18f   : > { %1934 = vmatpush3.xpose.msk.msra.mxu1 %vm602_vm2, %v768_v29  ;;  %v773_v47 = vld [vmem:[#allocation4] sm:$0xff] }
 0x190   : > { %1938 = vmatprep.subr.mxu1 %v2393_v1  ;;  %1954 = vmatpush3.msra.mxu0 %v773_v47 }
 0x191   : > { %1963 = vmatprep.subr.mxu0 %v2393_v1 }
 0x192   : > { %745 = vrot.lane.b32.xlu1 %v729_v27, %s2396_s27  ;;  %630 = vrot.lane.b32.xlu0 %v517_v23, %s2396_s27 }
 0x195   : > { %v763_v30 = vld [vmem:[#allocation2] sm:$0xff] }
 0x196   : > { %1936 = vmatmul.mubr.msk.f32.vlgmr.msra.gmra.mrb[2].mxu1 %vm602_vm2, %v763_v30 }
 0x197   : > { %1940 = vmatprep.mubr.msk.f32.mxu1 %vm2392_vm0, %v2393_v1 }
 0x1f8   : > { %v620_v35 = vpop.permute.xlu1 %619  ;;  %v608_v36 = vpop.permute.xlu0 %607 }
 0x1f9   : > { %1840 = vst.msk [vmem:[#allocation3 + $0x10] sm:$0xff] %vm602_vm2, %v620_v35  ;;  %1838 = vst.msk [vmem:[#allocation3 + $0x8] sm:$0xff] %vm602_vm2, %v608_v36 }
 0x200   : > { %v741_v37 = vpop.permute.xlu1 %740  ;;  %v736_v38 = vpop.permute.xlu0 %735  ;;  %v769_v39 = vld [vmem:[#allocation3 + $0x8] sm:$0xff]  ;;  %v770_v43 = vld [vmem:[#allocation3 + $0x10] sm:$0xff] }
 0x201   : > { %744 = vst.msk [vmem:[#allocation2 + $0x10] sm:$0xff] %vm602_vm2, %v741_v37  ;;  %739 = vst.msk [vmem:[#allocation2 + $0x8] sm:$0xff] %vm602_vm2, %v736_v38  ;;  %1939 = vmatpush3.xpose.msk.msra.mxu1 %vm602_vm2, %v769_v39 }
 0x202   : > { %1943 = vmatprep.subr.mxu1 %v2393_v1 }
 0x204   : > { %v746_v40 = vpop.permute.xlu1 %745  ;;  %v631_v41 = vpop.permute.xlu0 %630 }
 0x205   : > { %749 = vst.msk [vmem:[#allocation2 + $0x18] sm:$0xff] %vm602_vm2, %v746_v40  ;;  %1842 = vst.msk [vmem:[#allocation3 + $0x18] sm:$0xff] %vm602_vm2, %v631_v41 }
 0x208   : > { %v764_v42 = vld [vmem:[#allocation2 + $0x8] sm:$0xff]  ;;  %v765_v44 = vld [vmem:[#allocation2 + $0x10] sm:$0xff] }
 0x209   : > { %1941 = vmatmul.mubr.msk.f32.vlgmr.msra.gmra.mrb[4].mxu1 %vm602_vm2, %v764_v42 }
 0x20a   : > { %1944 = vmatpush3.xpose.msk.msra.mxu1 %vm602_vm2, %v770_v43  ;;  %1945 = vmatprep.mubr.msk.f32.mxu1 %vm2392_vm0, %v2393_v1 }
 0x20b   : > { %1948 = vmatprep.subr.mxu1 %v2393_v1 }
 0x20c   : > { %v771_v45 = vld [vmem:[#allocation3 + $0x18] sm:$0xff] }
 0x20d   : > { %1946 = vmatmul.mubr.msk.f32.vlgmr.msra.gmra.mrb[6].mxu1 %vm602_vm2, %v765_v44  ;;  %v766_v46 = vld [vmem:[#allocation2 + $0x18] sm:$0xff] }
 0x20e   : > { %1949 = vmatpush3.xpose.msk.msra.mxu1 %vm602_vm2, %v771_v45  ;;  %1950 = vmatprep.mubr.msk.f32.mxu1 %vm2392_vm0, %v2393_v1 }
 0x20f   : > { %1958 = vmatprep.subr.mxu1 %v2393_v1 }
 0x211   : > { %1951 = vmatmul.mubr.msk.f32.vlgmr.msra.gmra.mrb[8].mxu1 %vm602_vm2, %v766_v46 }
 0x212   : > { %1960 = vmatprep.mubr.msk.f32.mxu1 %vm2392_vm0, %v2393_v1 }
 0x269   : > { %v850_v49 = vpop.f32.mrb[2].mxu1 }
 0x26a   : > { %v1937_v50 = vpop.f32.mrb[3].mxu1  ;;  %v1086_v51 = vsel %vm602_vm2, %v850_v49, -inf }
 0x26b   : > { %1087 = vmax.xlane.f32.xlu0 %v1086_v51  ;;  %v1147_v50 = vld [vmem:[#allocation7 + $0x8] sm:$0xff] }
 0x2dc   : > { %v926_v53 = vpop.f32.mrb[4].mxu1 }
 0x2dd   : > { %v1942_v54 = vpop.f32.mrb[5].mxu1  ;;  %v1089_v55 = vsel %vm602_vm2, %v926_v53, -inf }
 0x2de   : > { %1090 = vmax.xlane.f32.xlu1 %v1089_v55 }
 0x2e0   : > { %v1002_v56 = vpop.f32.mrb[6].mxu1 }
 0x2e1   : > { %v1947_v57 = vpop.f32.mrb[7].mxu1  ;;  %v1092_v58 = vsel %vm602_vm2, %v1002_v56, -inf }
 0x2e2   : > { %1093 = vmax.xlane.f32.xlu0 %v1092_v58  ;;  %v1149_v57 = vld [vmem:[#allocation7 + $0x18] sm:$0xff] }
 0x2e4   : > { %v1078_v59 = vpop.f32.mrb[8].mxu1 }
 0x2e5   : > { %v1952_v60 = vpop.f32.mrb[9].mxu1  ;;  %v1095_v61 = vsel %vm602_vm2, %v1078_v59, -inf }
 0x2e6   : > { %1096 = vmax.xlane.f32.xlu0 %v1095_v61 }
 0x2f8   : > { %v1088_v63 = vpop.xlane.xlu0 %1087 }
 0x2f9   : > { %v2805_v2 = vmax.f32 %v2802_v62, %v1088_v63  ;;  %v1146_v63 = vld [vmem:[#allocation7] sm:$0xff] }
 0x2fb   : > { %v1102_v3 = vsub.f32 %v2802_v62, %v2805_v2  ;;  %1503 = vst.msk [vmem:[#allocation6] sm:$0xff] %vm750_vm3, %v2805_v2  ;;  %1116 = vperm.xlu1 %2124, %v2805_v2  }
 0x36b   : > { %v1091_v5 = vpop.xlane.xlu1 %1090 }
 0x36c   : > { %v2815_v6 = vmax.f32 %v2812_v4, %v1091_v5 }
 0x36e   : > { %v1103_v8 = vsub.f32 %v2812_v4, %v2815_v6  ;;  %1504 = vst.msk [vmem:[#allocation6 + $0x8] sm:$0xff] %vm750_vm3, %v2815_v6  ;;  %1121 = vperm.xlu0 %2125, %v2815_v6  }
 0x36f   : > { %v1094_v9 = vpop.xlane.xlu0 %1093 }
 0x370   : > { %v2825_v10 = vmax.f32 %v2817_v7, %v1094_v9  ;;  %v1108_v40 = vmul.f32 1.442695, %v1103_v8 }
 0x372   : > { %v1104_v12 = vsub.f32 %v2817_v7, %v2825_v10  ;;  %1505 = vst.msk [vmem:[#allocation6 + $0x10] sm:$0xff] %vm750_vm3, %v2825_v10  ;;  %1126 = vperm.xlu1 %2124, %v2825_v10  }
 0x373   : > { %v1097_v13 = vpop.xlane.xlu0 %1096 }
 0x374   : > { %v1101_v14 = vmax.f32 %v2827_v11, %v1097_v13  ;;  %v1110_v43 = vmul.f32 1.442695, %v1104_v12  ;;  %v1176_v13 = vld [vmem:[#allocation5 + $0x8] sm:$0xff] }
 0x376   : > { %v1105_v15 = vsub.f32 %v2827_v11, %v1101_v14  ;;  %1506 = vst.msk [vmem:[#allocation6 + $0x18] sm:$0xff] %vm750_vm3, %v1101_v14  ;;  %1131 = vperm.xlu1 %2124, %v1101_v14  }
 0x378   : > { %v1112_v44 = vmul.f32 1.442695, %v1105_v15 }
 0x37a   : > { %v1117_v16 = vpop.permute.xlu1 %1116  ;;  %614 = vrot.lane.b32.xlu1 %v2760_v33, %s2395_s8  ;;  %s1861_s8 = sshll.u32 %s2972_s22, 7  ;;  %s2296_s22 = sshll.u32 %s2402_s15, 4  ;;  %s2297_s22 = int_to_ptr.vmem [resolvable:$false] %s2296_s22 }
 0x37b   : > { %v1134_v17 = vsub.f32 %v850_v49, %v1117_v16  ;;  %v1106_v49 = vmul.f32 1.442695, %v1102_v3  ;;  %s2298_s16 = scalar_lea.vmem %s2297_s22, 256  ;;  %p2299_p0 = scmp.lt.s32.totalorder %s2890_s26, %s2297_s22 }
 0x37d   : > { %v1138_v18 = vmul.f32 1.442695, %v1134_v17  ;;  %v1177_v17 = vld [vmem:[#allocation5 + $0x10] sm:$0xff] }
 0x37e   : > { %625 = vrot.lane.b32.xlu1 %v2760_v33, %s2394_s12  ;;  %s2973_s12 = sld [smem:[#allocation25_spill]] }
 0x37f   : > { %2126 = vpow2.f32 %v1138_v18 }
 0x382   : > { %636 = vrot.lane.b32.xlu1 %v2760_v33, %s2396_s27 }
 0x389   : > { %v2127_v19 = vpop.eup %2126 }
 0x38a   : > { %1956 = vmatmul.mubr.msk.f32.vlgmr.msra.gmra.mrb[4].mxu0 %vm602_vm2, %v2127_v19  ;;  %v1154_v42 = vsel %vm602_vm2, %v2127_v19, 0.0 }
 0x38b   : > { %1965 = vmatprep.mubr.msk.f32.mxu0 %vm2392_vm0, %v2393_v1 }
 0x3ed   : > { %v1122_v20 = vpop.permute.xlu0 %1121 }
 0x3ee   : > { %v1135_v21 = vsub.f32 %v926_v53, %v1122_v20  ;;  %v1148_v53 = vld [vmem:[#allocation7 + $0x10] sm:$0xff] }
 0x3f0   : > { %v1140_v22 = vmul.f32 1.442695, %v1135_v21 }
 0x3f1   : > { %v1127_v23 = vpop.permute.xlu1 %1126 }
 0x3f2   : > { %2128 = vpow2.f32 %v1140_v22  ;;  %v1136_v24 = vsub.f32 %v1002_v56, %v1127_v23  ;;  %v1178_v22 = vld [vmem:[#allocation5 + $0x18] sm:$0xff] }
 0x3f4   : > { %v1142_v25 = vmul.f32 1.442695, %v1136_v24 }
 0x3f5   : > { %v1132_v26 = vpop.permute.xlu1 %1131 }
 0x3f6   : > { %2130 = vpow2.f32 %v1142_v25  ;;  %v1137_v27 = vsub.f32 %v1078_v59, %v1132_v26 }
 0x3f8   : > { %v1144_v28 = vmul.f32 1.442695, %v1137_v27 }
 0x3f9   : > { %v615_v29 = vpop.permute.xlu1 %614 }
 0x3fa   : > { %2132 = vpow2.f32 %v1144_v28  ;;  %1839 = vst.msk [vmem:[#allocation4 + $0x8] sm:$0xff] %vm602_vm2, %v615_v29 }
 0x3fb   : > { %2134 = vpow2.f32 %v1108_v40 }
 0x3fc   : > { %v2129_v30 = vpop.eup %2128  ;;  %2136 = vpow2.f32 %v1110_v43  ;;  %v1175_v43 = vld [vmem:[#allocation5] sm:$0xff] }
 0x3fd   : > { %v626_v31 = vpop.permute.xlu1 %625  ;;  %v1157_v32 = vsel %vm602_vm2, %v2129_v30, 0.0  ;;  %2138 = vpow2.f32 %v1112_v44 }
 0x3fe   : > { %1841 = vst.msk [vmem:[#allocation4 + $0x10] sm:$0xff] %vm602_vm2, %v626_v31  ;;  %1158 = vadd.xlane.f32.xlu1 %v1157_v32  ;;  %2140 = vpow2.f32 %v1106_v49  ;;  %v1566_v31 = vld [vmem:[#allocation17] sm:$0xff]  ;;  %v1567_v32 = vld [vmem:[#allocation17 + $0x8] sm:$0xff] }
 0x400   : > { %v2131_v33 = vpop.eup %2130 }
 0x401   : > { %v637_v34 = vpop.permute.xlu1 %636  ;;  %v1160_v35 = vsel %vm602_vm2, %v2131_v33, 0.0  ;;  %v774_v36 = vld [vmem:[#allocation4 + $0x8] sm:$0xff] }
 0x402   : > { %1843 = vst.msk [vmem:[#allocation4 + $0x18] sm:$0xff] %vm602_vm2, %v637_v34  ;;  %1161 = vadd.xlane.f32.xlu0 %v1160_v35  ;;  %1959 = vmatpush3.msra.mxu1 %v774_v36  ;;  %v1568_v34 = vld [vmem:[#allocation17 + $0x10] sm:$0xff]  ;;  %v1569_v35 = vld [vmem:[#allocation17 + $0x18] sm:$0xff] }
 0x403   : > { %1961 = vmatmul.mubr.msk.f32.vlgmr.msra.gmra.mrb[10].mxu1 %vm602_vm2, %v2129_v30  ;;  %1968 = vmatprep.subr.mxu1 %v2393_v1 }
 0x404   : > { %v2133_v37 = vpop.eup %2132  ;;  %1970 = vmatprep.mubr.msk.f32.mxu1 %vm2392_vm0, %v2393_v1 }
 0x405   : > { %v775_v38 = vld [vmem:[#allocation4 + $0x10] sm:$0xff]  ;;  %v1163_v39 = vsel %vm602_vm2, %v2133_v37, 0.0  ;;  %v2135_v45 = vpop.eup %2134 }
 0x406   : > { %1964 = vmatpush3.msra.mxu0 %v775_v38  ;;  %1164 = vadd.xlane.f32.xlu1 %v1163_v39  ;;  %v2137_v46 = vpop.eup %2136  ;;  %v1151_v51 = vmul.f32 %v2135_v45, %v1147_v50  ;;  %v2006_v38 = vpack.c.bf16 %v1569_v35, %v1568_v34 }
 0x407   : > { %1966 = vmatmul.mubr.msk.f32.vlgmr.msra.gmra.mrb[6].mxu0 %vm602_vm2, %v2131_v33  ;;  %2002 = vmatprep.subr.bf16.mxu0 %v2391_v0  ;;  %v2139_v47 = vpop.eup %2138  ;;  %v1152_v55 = vmul.f32 %v2137_v46, %v1148_v53  ;;  %v2003_v33 = vpack.c.bf16 %v1567_v32, %v1566_v31 }
 0x408   : > { %1981 = vmatprep.mubr.msk.f32.mxu0 %vm2392_vm0, %v2393_v1  ;;  %v1153_v59 = vmul.f32 %v2139_v47, %v1149_v57  ;;  %v2141_v60 = vpop.eup %2140 }
 0x409   : > { %v776_v41 = vld [vmem:[#allocation4 + $0x18] sm:$0xff]  ;;  %v1150_v3 = vmul.f32 %v2141_v60, %v1146_v63  ;;  %2004 = vmatpush3.bf16.msra.mxu0 %v2003_v33 }
 0x40a   : > { %1969 = vmatpush3.msra.mxu1 %v776_v41  ;;  %1155 = vadd.xlane.f32.xlu1 %v1154_v42 }
 0x40b   : > { %1971 = vmatmul.mubr.msk.f32.vlgmr.msra.gmra.mrb[12].mxu1 %vm602_vm2, %v2133_v37  ;;  %2005 = vmatprep.subr.bf16.mxu0 %v2391_v0 }
 0x40d   : > { %2007 = vmatpush3.bf16.msra.mxu0 %v2006_v38 }
 0x418   : > { %1186 = vperm.xlu0 %2125, %v2135_v45  }
 0x41b   : > { %1191 = vperm.xlu1 %2124, %v2137_v46  }
 0x41f   : > { %1196 = vperm.xlu1 %2124, %v2139_v47  }
 0x45d   : > { %v2862_v1 = vpop.f32.mrb[4].mxu0 }
 0x45e   : > { %v1957_v48 = vpop.f32.mrb[5].mxu0 }
 0x48b   : > { %v1159_v52 = vpop.xlane.xlu1 %1158 }
 0x48c   : > { %v1167_v54 = vadd.f32 %v1159_v52, %v1151_v51 }
 0x48e   : > { %1172 = vst.msk [vmem:[#allocation7 + $0x8] sm:$0xff] %vm750_vm3, %v1167_v54 }
 0x48f   : > { %v1162_v56 = vpop.xlane.xlu0 %1161 }
 0x490   : > { %v1168_v58 = vadd.f32 %v1162_v56, %v1152_v55  ;;  %v1858_v55 = vld [vmem:[%s2973_s12] ss:$0 sm:$0xff] }
 0x492   : > { %1173 = vst.msk [vmem:[#allocation7 + $0x10] sm:$0xff] %vm750_vm3, %v1168_v58 }
 0x493   : > { %v1165_v61 = vpop.xlane.xlu1 %1164 }
 0x494   : > { %v1169_v62 = vadd.f32 %v1165_v61, %v1153_v59 }
 0x495   : > { %v1511_v2 = vld [vmem:[#allocation7 + $0x8] sm:$0xff] }
 0x496   : > { %1174 = vst.msk [vmem:[#allocation7 + $0x18] sm:$0xff] %vm750_vm3, %v1169_v62  ;;  %2142 = vrcp.f32 %v1511_v2 }
 0x497   : > { %v1156_v4 = vpop.xlane.xlu1 %1155  ;;  %v1187_v14 = vpop.permute.xlu0 %1186 }
 0x498   : > { %v1166_v5 = vadd.f32 %v1156_v4, %v1150_v3  ;;  %v1200_v16 = vmul.f32 %v1187_v14, %v1176_v13 }
 0x499   : > { %v1512_v6 = vld [vmem:[#allocation7 + $0x10] sm:$0xff] }
 0x49a   : > { %1171 = vst.msk [vmem:[#allocation7] sm:$0xff] %vm750_vm3, %v1166_v5  ;;  %2144 = vrcp.f32 %v1512_v6 }
 0x49b   : > { %v1192_v15 = vpop.permute.xlu1 %1191 }
 0x49c   : > { %v1201_v21 = vmul.f32 %v1192_v15, %v1177_v17 }
 0x49d   : > { %v1513_v7 = vld [vmem:[#allocation7 + $0x18] sm:$0xff] }
 0x49e   : > { %2146 = vrcp.f32 %v1513_v7 }
 0x49f   : > { %v1197_v23 = vpop.permute.xlu1 %1196 }
 0x4a0   : > { %v2143_v8 = vpop.eup %2142  ;;  %v1202_v27 = vmul.f32 %v1197_v23, %v1178_v22 }
 0x4a1   : > { %1529 = vperm.xlu0 %2125, %v2143_v8   ;;  %v1510_v9 = vld [vmem:[#allocation7] sm:$0xff] }
 0x4a2   : > { %2148 = vrcp.f32 %v1510_v9 }
 0x4a4   : > { %v2145_v10 = vpop.eup %2144 }
 0x4a5   : > { %1534 = vperm.xlu1 %2124, %v2145_v10  }
 0x4a8   : > { %v2147_v11 = vpop.eup %2146 }
 0x4a9   : > { %1539 = vperm.xlu0 %2125, %v2147_v11   ;;  %1181 = vperm.xlu1 %2124, %v2141_v60  }
 0x4ac   : > { %v2149_v12 = vpop.eup %2148 }
 0x4ad   : > { %1524 = vperm.xlu0 %2125, %v2149_v12  }
 0x4d6   : > { %v1345_v18 = vpop.f32.mrb[10].mxu1 }
 0x4d7   : > { %v1496_v19 = vadd.f32 %v1345_v18, %v1200_v16  ;;  %v1962_v20 = vpop.f32.mrb[11].mxu1 }
 0x4d9   : > { %1500 = vst.msk [vmem:[#allocation5 + $0x8] sm:$0xff] %vm602_vm2, %v1496_v19 }
 0x4da   : > { %v1418_v24 = vpop.f32.mrb[6].mxu0 }
 0x4db   : > { %v1497_v25 = vadd.f32 %v1418_v24, %v1201_v21  ;;  %v1967_v26 = vpop.f32.mrb[7].mxu0 }
 0x4dd   : > { %1501 = vst.msk [vmem:[#allocation5 + $0x10] sm:$0xff] %vm602_vm2, %v1497_v25 }
 0x4de   : > { %v1491_v28 = vpop.f32.mrb[12].mxu1 }
 0x4df   : > { %v1498_v29 = vadd.f32 %v1491_v28, %v1202_v27  ;;  %v1972_v30 = vpop.f32.mrb[13].mxu1 }
 0x4e0   : > { %v1519_v37 = vld [vmem:[#allocation5 + $0x8] sm:$0xff] }
 0x4e1   : > { %1502 = vst.msk [vmem:[#allocation5 + $0x18] sm:$0xff] %vm602_vm2, %v1498_v29 }
 0x4e4   : > { %v1520_v41 = vld [vmem:[#allocation5 + $0x10] sm:$0xff] }
 0x4e8   : > { %v1521_v46 = vld [vmem:[#allocation5 + $0x18] sm:$0xff] }
 0x520   : > { %v1530_v36 = vpop.permute.xlu0 %1529 }
 0x521   : > { %v1543_v39 = vmul.f32 %v1530_v36, %v1519_v37 }
 0x523   : > { %1548 = vrot.lane.b32.xlu1 %v1543_v39, %s2399_s25  ;;  %s2888_s25 = scalar_lea.hbm %s2974_s20, %s1861_s8 }
 0x524   : > { %v1535_v40 = vpop.permute.xlu1 %1534 }
 0x525   : > { %v1544_v42 = vmul.f32 %v1535_v40, %v1520_v41 }
 0x527   : > { %1554 = vrot.lane.b32.xlu0 %v1544_v42, %s2400_s19  ;;  %s1653_s19 = scalar_lea.sflag [#allocation11], %s2691_s1 }
 0x528   : > { %v1182_v44 = vpop.permute.xlu1 %1181  ;;  %v1540_v45 = vpop.permute.xlu0 %1539 }
 0x529   : > { %v1199_v47 = vmul.f32 %v1182_v44, %v1175_v43  ;;  %v1545_v48 = vmul.f32 %v1540_v45, %v1521_v46 }
 0x52b   : > { %v1495_v49 = vadd.f32 %v2862_v1, %v1199_v47  ;;  %1560 = vrot.lane.b32.xlu1 %v1545_v48, %s2401_s24  ;;  %s2292_s24 = scalar_lea.vmem %s2890_s26, 128 }
 0x52c   : > { %v1525_v0 = vpop.permute.xlu0 %1524  ;;  %p2293_p2 = scmp.ne.s32.totalorder %s2890_s26, %s2292_s24  ;;  %p2300_p7 = scmp.lt.s32.totalorder %s2298_s16, %s2292_s24 }
 0x52d   : > { %1499 = vst.msk [vmem:[#allocation5] sm:$0xff] %vm602_vm2, %v1495_v49 }
 0x52e   : > { %p2294_p10 = pnand %p2293_p2, %p2975_p9  ;;  %p2301_p5 = por %p2300_p7, %p2299_p0 }
 0x530   : > { %p2295_p1 = pneg %p2294_p10 }
 0x532   : > { %p2302_p8 = pnand %p2301_p5, %p2295_p1 }
 0x534   : > { %v1518_v50 = vld [vmem:[#allocation5] sm:$0xff] }
 0x535   : > { %v1542_v51 = vmul.f32 %v1525_v0, %v1518_v50 }
 0x537   : > { %1546 = vst.msk [vmem:[#allocation8] sm:$0xff] %vm602_vm2, %v1542_v51 }
 0x595   : > { %v1549_v52 = vpop.permute.xlu1 %1548 }
 0x596   : > { %1552 = vst.msk [vmem:[#allocation8] sm:$0xff] %vm1551_vm4, %v1549_v52 }
 0x599   : > { %v1555_v53 = vpop.permute.xlu0 %1554 }
 0x59a   : > { %1558 = vst.msk [vmem:[#allocation8] sm:$0xff] %vm1557_vm5, %v1555_v53 }
 0x59d   : > { %v1561_v1 = vpop.permute.xlu1 %1560 }
 0x59e   : > { %1564 = vst.msk [vmem:[#allocation8] sm:$0xff] %vm1563_vm6, %v1561_v1 }
 0x5a5   : > { %v1565_v54 = vld [vmem:[#allocation8] sm:$0xff] }
 0x5a6   : > { %1982 = vmatmul.mubr.msk.f32.vlgmr.msra.gmra.mrb[8].mxu0 %vm446_vm1, %v1565_v54 }
 0x679   : > { %v1647_v56 = vpop.f32.mrb[8].mxu0 }
 0x67a   : > { %v1648_v57 = vadd.f32 %v1858_v55, %v1647_v56  ;;  %v1983_v58 = vpop.f32.mrb[9].mxu0 }
 0x67c   : > { %1651 = vst.msk [vmem:[%s426_s9] sm:$0xff] %vm446_vm1, %v1648_v57 }
 0x67d   : > { %2305 = shalt.err (!%p2302_p8)
}
 0x67e   : > { %s2306_s1 = scalar_lea.hbm %s2888_s25, 128  ;;  %s2310_s8 = scalar_lea.hbm %s2974_s20, 256 }
 0x67f   : > { %p2307_p3 = scmp.ne.s32.totalorder %s2888_s25, %s2306_s1  ;;  %p2311_p13 = scmp.lt.u32.totalorder %s2888_s25, %s2974_s20 }
 0x680   : > { %p2312_p12 = scmp.lt.u32.totalorder %s2310_s8, %s2306_s1  ;;  %p2314_p2 = scmp.lt.u32.totalorder %s2306_s1, %s2888_s25 }
 0x681   : > { %p2308_p11 = pnand %p2307_p3, %p2975_p9 }
 0x682   : > { %p2313_p4 = por %p2312_p12, %p2311_p13 }
 0x683   : > { %p2309_p6 = pneg %p2308_p11 }
 0x684   : > { %p2315_p10 = por %p2314_p2, %p2313_p4 }
 0x686   : > { %p2316_p1 = pnand %p2315_p10, %p2309_p6 }
 0x688   : > { %2319 = shalt.err (!%p2316_p1)
}
 0x689   : > { %2026 = dma.vmem_to_hbm [thread:$0]  (%p2975_p9), %s2890_s26, 128, %s2888_s25, %s1653_s19  }
 0x68a PF: > { %s1679_s23 = sand.u32 1, %s2362_s30   ;;  %p2976_p0 = scmp.ne.s32.totalorder %s2968_s21, 0 }
 0x68b   : > { %p2977_p7 = scmp.ge.s32.totalorder %s2382_s14, 2  ;;  %s1680_s24 = scalar_lea.sflag [#allocation11], %s1679_s23 }
 0x68d   : > { %p2046_p5 = pnand %p2977_p7, %p2976_p0 }
 0x68f   : > { %2357 = dma.done.wait (!%p2046_p5), %s1680_s24, 128  }
 0x690   : > { %2359 = vsyncadd (!%p2046_p5), %s1680_s24, 4294967168  ;;  %s27_s14 = sadd.s32 1, %s2382_s14   ;;  %s2978_s30 = smov %s2366_s10 }
 0x691   : > { %p24_p8 = scmp.ge.s32.totalorder %s27_s14, 4   ;;  %s2979_s10 = smov %s2370_s11 }
 0x692   : > { %s2980_s11 = smov %s2641_s29  ;;  %s2981_s12 = smov %s2378_s13 }
 0x693   : > { %s2982_s13 = smov %s2984_s18  ;;  %26 = sbr.rel (!%p24_p8) target bundleno = 12 (0xc), region = 144 }
 0x69a   :  { %1685 = vsyncpa [#allocation10], 1 }
 0x69b   :  { %1687 = vsyncpa [#allocation10 + $0x1], 1 }
 0x69c   :  { %1688 = vsyncpa [#allocation13], 1 }
 0x69d   :  { %1689 = vsyncpa [#allocation16], 1 }
 0x69e   :  { %1690 = vsyncpa [#allocation11], 1 }
 0x69f   :  { %1692 = vsyncpa [#allocation11 + $0x1], 1 }

</bundles_post_ra>
